<compile_context>
chip_gen: v6e
topology: v6e:2x2x1
jax: 0.10.0
libtpu: 0.0.40
codegen_flags: <defaults>
</compile_context>

<pallas_src>
from functools import partial

import jax
import jax.numpy as jnp
from jax.experimental import pallas as pl
from jax.experimental.pallas import tpu as pltpu

LN_EPS = 1e-5  # nn.LayerNorm default eps

# Row layout of the packed (NUM_VEC_ROWS, C) per-channel vector bundle.
(_NQ_W, _NQ_B, _NK_W, _NK_B, _NV_W, _NV_B,
 _Q_B, _K_B, _V_B, _P_B) = range(10)
NUM_VEC_ROWS = 10


def _layernorm(v, w, b, eps):
    mu = jnp.mean(v, axis=-1, keepdims=True)
    var = jnp.mean(jnp.square(v - mu), axis=-1, keepdims=True)
    return (v - mu) * jax.lax.rsqrt(var + eps) * w + b


def attentive_block_kernel(xq_ref, posq_ref, xkv_ref, posk_ref, vec_ref,
                           wq_ref, wk_ref, wv_ref, wp_ref, o_ref,
                           *, B, Nq, Nk, num_heads, eps, mm_dtype,
                           approx_recip):
    f32 = jnp.float32
    vecs = vec_ref[...]                        # (NUM_VEC_ROWS, C), fp32

    # --- pre-norms (fp32 elementwise; v5e VPU/EUP have no bf16) ------------
    xq = xq_ref[...] + posq_ref[...]           # (B*Nq, C)
    xk = xkv_ref[...] + posk_ref[...]          # (B*Nk, C)
    xv = xkv_ref[...]                          # (B*Nk, C)

    hq = _layernorm(xq, vecs[_NQ_W], vecs[_NQ_B], eps).astype(mm_dtype)
    hk = _layernorm(xk, vecs[_NK_W], vecs[_NK_B], eps).astype(mm_dtype)
    hv = _layernorm(xv, vecs[_NV_W], vecs[_NV_B], eps).astype(mm_dtype)

    # --- q/k/v projections on the flattened batch (big-M, K=C matmuls) -----
    # NOTE: `scale` is already folded into wq and the q bias on the host side.
    q = jnp.dot(hq, wq_ref[...], preferred_element_type=f32) + vecs[_Q_B]
    k = jnp.dot(hk, wk_ref[...], preferred_element_type=f32) + vecs[_K_B]
    v = jnp.dot(hv, wv_ref[...], preferred_element_type=f32) + vecs[_V_B]

    C = q.shape[-1]
    H = num_heads
    Dh = C // H

    # --- (b, h)-batched attention -------------------------------------------
    # Split heads with static lane slices while still fp32 (avoids mid-tile
    # bf16 row slicing), stack along one leading batch axis g = h*B + b.
    def split_heads(x, n):
        x3 = x.reshape(B, n, C)
        return jnp.concatenate(
            [x3[:, :, h * Dh:(h + 1) * Dh] for h in range(H)], axis=0
        ).astype(mm_dtype)                                      # (H*B, n, Dh)

    qs = split_heads(q, Nq)
    ks = split_heads(k, Nk)
    vs = split_heads(v, Nk)

    # one batched QK^T, one vectorized softmax, one batched PV
    att = jnp.einsum('gqd,gkd->gqk', qs, ks,
                     preferred_element_type=f32)                # (H*B, Nq, Nk)
    att = jnp.exp(att - jnp.max(att, axis=-1, keepdims=True))
    inv = pl.reciprocal(jnp.sum(att, axis=-1, keepdims=True),
                        approx=approx_recip)
    att = (att * inv).astype(mm_dtype)

    o = jnp.einsum('gqk,gkd->gqd', att, vs,
                   preferred_element_type=f32)                  # (H*B, Nq, Dh)

    # --- concat heads back onto lanes; one K=C output projection ------------
    attn_out = jnp.concatenate(
        [o[h * B:(h + 1) * B].reshape(B * Nq, Dh) for h in range(H)],
        axis=-1).astype(mm_dtype)                               # (B*Nq, C)

    out = jnp.dot(attn_out, wp_ref[...], preferred_element_type=f32) + vecs[_P_B]
    o_ref[...] = out.astype(o_ref.dtype)


def attentive_block_forward(x_q, x_kv, pos_q, pos_k, params, *, num_heads,
                            matmul_dtype=jnp.bfloat16):
    B, Nq, C = x_q.shape
    Nk = x_kv.shape[1]
    Cout = params["proj_w"].shape[0]
    # TODO(synk): packed-bias layout assumes out_dim == dim (module default);
    # pass proj_b separately if out_dim differs.
    assert Cout == C
    Dh = C // num_heads
    scale = Dh ** (-0.5)
    wdt = matmul_dtype
    f32 = jnp.float32

    # Pack all per-channel vectors into one (10, C) input (single DMA).
    vecs = jnp.stack([
        params["norm1_q_w"], params["norm1_q_b"],
        params["norm1_k_w"], params["norm1_k_b"],
        params["norm1_v_w"], params["norm1_v_b"],
        params["q_b"] * scale, params["k_b"], params["v_b"],
        params["proj_b"],
    ], axis=0).astype(f32)

    # nn.Linear weights (out,in) -> (in,out); fold `scale` into the q branch.
    inputs = [
        x_q.reshape(B * Nq, C).astype(f32),
        pos_q.reshape(B * Nq, C).astype(f32),
        x_kv.reshape(B * Nk, C).astype(f32),
        pos_k.reshape(B * Nk, C).astype(f32),
        vecs,
        (params["q_w"].T * scale).astype(wdt),
        params["k_w"].T.astype(wdt),
        params["v_w"].T.astype(wdt),
        params["proj_w"].T.astype(wdt),
    ]

    def full_spec(shape):
        n = len(shape)
        return pl.BlockSpec(shape, lambda i, _n=n: (0,) * _n)

    out = pl.pallas_call(
        partial(attentive_block_kernel, B=B, Nq=Nq, Nk=Nk,
                num_heads=num_heads, eps=LN_EPS, mm_dtype=wdt,
                approx_recip=(wdt != jnp.float32)),
        out_shape=jax.ShapeDtypeStruct((B * Nq, Cout), x_q.dtype),
        grid_spec=pltpu.PrefetchScalarGridSpec(
            num_scalar_prefetch=0,
            grid=(1,),                       # single step: whole problem in VMEM
            in_specs=[full_spec(a.shape) for a in inputs],
            out_specs=pl.BlockSpec((B * Nq, Cout), lambda i: (0, 0)),
        ),
        compiler_params=pltpu.CompilerParams(
            dimension_semantics=("arbitrary",)),
    )(*inputs)
    return out.reshape(B, Nq, Cout)


def attentive_block_reference(x_q, x_kv, pos_q, pos_k, params, *, num_heads):
    """Pure-JAX reference mirroring the PyTorch forward exactly (fp32)."""
    def ln(v, w, b):
        mu = jnp.mean(v, axis=-1, keepdims=True)
        var = jnp.mean(jnp.square(v - mu), axis=-1, keepdims=True)
        return (v - mu) / jnp.sqrt(var + LN_EPS) * w + b

    B, Nq, C = x_q.shape
    Nk = x_kv.shape[1]
    H = num_heads
    Dh = C // H
    scale = Dh ** (-0.5)

    xq = ln(x_q + pos_q, params["norm1_q_w"], params["norm1_q_b"])
    xk = ln(x_kv + pos_k, params["norm1_k_w"], params["norm1_k_b"])
    xv = ln(x_kv, params["norm1_v_w"], params["norm1_v_b"])

    q = xq @ params["q_w"].T + params["q_b"]
    k = xk @ params["k_w"].T + params["k_b"]
    v = xv @ params["v_w"].T + params["v_b"]

    q = q.reshape(B, Nq, H, Dh).transpose(0, 2, 1, 3) * scale
    k = k.reshape(B, Nk, H, Dh).transpose(0, 2, 1, 3)
    v = v.reshape(B, Nk, H, Dh).transpose(0, 2, 1, 3)

    att = jax.nn.softmax(q @ jnp.swapaxes(k, -1, -2), axis=-1)
    out = (att @ v).transpose(0, 2, 1, 3).reshape(B, Nq, C)
    out = out @ params["proj_w"].T + params["proj_b"]
    return out


if __name__ == "__main__":
    # AttentiveBlock config: dim=128 (lane-dense), num_heads=4 (head_dim=32),
    # qkv_bias=True, qk_scale=None, all dropout/droppath = 0 (eval).
    B, Nq, Nk, C, H = 2, 8, 16, 128, 4

    key = jax.random.PRNGKey(0)
    ks = jax.random.split(key, 20)

    def nrm(k, shape, s=0.02):
        return (s * jax.random.normal(k, shape)).astype(jnp.float32)

    params = {
        "norm1_q_w": 1.0 + nrm(ks[0], (C,), 0.1), "norm1_q_b": nrm(ks[1], (C,)),
        "norm1_k_w": 1.0 + nrm(ks[2], (C,), 0.1), "norm1_k_b": nrm(ks[3], (C,)),
        "norm1_v_w": 1.0 + nrm(ks[4], (C,), 0.1), "norm1_v_b": nrm(ks[5], (C,)),
        "q_w": nrm(ks[6], (C, C)), "q_b": nrm(ks[7], (C,)),
        "k_w": nrm(ks[8], (C, C)), "k_b": nrm(ks[9], (C,)),
        "v_w": nrm(ks[10], (C, C)), "v_b": nrm(ks[11], (C,)),
        "proj_w": nrm(ks[12], (C, C)), "proj_b": nrm(ks[13], (C,)),
    }

    x_q = jax.random.normal(ks[14], (B, Nq, C), dtype=jnp.float32)
    x_kv = jax.random.normal(ks[15], (B, Nk, C), dtype=jnp.float32)
    pos_q = 0.02 * jax.random.normal(ks[16], (B, Nq, C), dtype=jnp.float32)
    pos_k = 0.02 * jax.random.normal(ks[17], (B, Nk, C), dtype=jnp.float32)

    ref = jax.block_until_ready(
        attentive_block_reference(x_q, x_kv, pos_q, pos_k, params, num_heads=H))
    denom = float(jnp.max(jnp.abs(ref))) + 1e-6

    # default bf16 MXU path (fp32 LN/softmax/accumulation) — loose check
    out_bf = jax.block_until_ready(
        attentive_block_forward(x_q, x_kv, pos_q, pos_k, params, num_heads=H))
    assert out_bf.shape == (B, Nq, C)
    err_bf = float(jnp.max(jnp.abs(out_bf - ref)))
    assert err_bf <= 3e-2 * denom + 1e-3, f"bf16 mismatch: {err_bf} (ref max {denom})"

    # fp32 matmul path (exact softmax reciprocal) — tight check
    out32 = jax.block_until_ready(
        attentive_block_forward(x_q, x_kv, pos_q, pos_k, params, num_heads=H,
                                matmul_dtype=jnp.float32))
    err32 = float(jnp.max(jnp.abs(out32 - ref)))
    assert err32 <= 1e-3 * denom + 1e-5, f"fp32 mismatch: {err32} (ref max {denom})"

    print("KERNEL_OK")
</pallas_src>

<mosaic_0001>
module attributes {stable_mosaic.version = 11 : i64} {
  func.func @attentive_block_kernel(%arg0: i32, %arg1: memref<16x128xf32, #tpu.memory_space<vmem>>, %arg2: memref<16x128xf32, #tpu.memory_space<vmem>>, %arg3: memref<32x128xf32, #tpu.memory_space<vmem>>, %arg4: memref<32x128xf32, #tpu.memory_space<vmem>>, %arg5: memref<10x128xf32, #tpu.memory_space<vmem>>, %arg6: memref<128x128xbf16, #tpu.memory_space<vmem>>, %arg7: memref<128x128xbf16, #tpu.memory_space<vmem>>, %arg8: memref<128x128xbf16, #tpu.memory_space<vmem>>, %arg9: memref<128x128xbf16, #tpu.memory_space<vmem>>, %arg10: memref<16x128xf32, #tpu.memory_space<vmem>>) attributes {dimension_semantics = [#tpu.dimension_semantics<arbitrary>], iteration_bounds = array<i64: 1>, scalar_prefetch = 0 : i64, scratch_operands = 0 : i64, tpu.core_type = #tpu.core_type<tc>, window_params = [{pipeline_mode = #tpu.pipeline_mode<synchronous>, transform_indices = @transform_0, window_bounds = array<i64: 16, 128>}, {pipeline_mode = #tpu.pipeline_mode<synchronous>, transform_indices = @transform_1, window_bounds = array<i64: 16, 128>}, {pipeline_mode = #tpu.pipeline_mode<synchronous>, transform_indices = @transform_2, window_bounds = array<i64: 32, 128>}, {pipeline_mode = #tpu.pipeline_mode<synchronous>, transform_indices = @transform_3, window_bounds = array<i64: 32, 128>}, {pipeline_mode = #tpu.pipeline_mode<synchronous>, transform_indices = @transform_4, window_bounds = array<i64: 10, 128>}, {pipeline_mode = #tpu.pipeline_mode<synchronous>, transform_indices = @transform_5, window_bounds = array<i64: 128, 128>}, {pipeline_mode = #tpu.pipeline_mode<synchronous>, transform_indices = @transform_6, window_bounds = array<i64: 128, 128>}, {pipeline_mode = #tpu.pipeline_mode<synchronous>, transform_indices = @transform_7, window_bounds = array<i64: 128, 128>}, {pipeline_mode = #tpu.pipeline_mode<synchronous>, transform_indices = @transform_8, window_bounds = array<i64: 128, 128>}, {pipeline_mode = #tpu.pipeline_mode<synchronous>, transform_indices = @transform_9, window_bounds = array<i64: 16, 128>}]} {
    %c0 = arith.constant 0 : index
    %c0_0 = arith.constant 0 : index
    %0 = vector.load %arg5[%c0, %c0_0] : memref<10x128xf32, #tpu.memory_space<vmem>>, vector<10x128xf32>
    %c0_1 = arith.constant 0 : index
    %c0_2 = arith.constant 0 : index
    %1 = vector.load %arg1[%c0_1, %c0_2] : memref<16x128xf32, #tpu.memory_space<vmem>>, vector<16x128xf32>
    %c0_3 = arith.constant 0 : index
    %c0_4 = arith.constant 0 : index
    %2 = vector.load %arg2[%c0_3, %c0_4] : memref<16x128xf32, #tpu.memory_space<vmem>>, vector<16x128xf32>
    %3 = arith.addf %1, %2 : vector<16x128xf32>
    %c0_5 = arith.constant 0 : index
    %c0_6 = arith.constant 0 : index
    %4 = vector.load %arg3[%c0_5, %c0_6] : memref<32x128xf32, #tpu.memory_space<vmem>>, vector<32x128xf32>
    %c0_7 = arith.constant 0 : index
    %c0_8 = arith.constant 0 : index
    %5 = vector.load %arg4[%c0_7, %c0_8] : memref<32x128xf32, #tpu.memory_space<vmem>>, vector<32x128xf32>
    %6 = arith.addf %4, %5 : vector<32x128xf32>
    %c0_9 = arith.constant 0 : index
    %c0_10 = arith.constant 0 : index
    %7 = vector.load %arg3[%c0_9, %c0_10] : memref<32x128xf32, #tpu.memory_space<vmem>>, vector<32x128xf32>
    %8 = vector.extract_strided_slice %0 {offsets = [0, 0], sizes = [1, 128], strides = [1, 1]} : vector<10x128xf32> to vector<1x128xf32>
    %9 = vector.shape_cast %8 : vector<1x128xf32> to vector<128xf32>
    %10 = vector.extract_strided_slice %0 {offsets = [1, 0], sizes = [1, 128], strides = [1, 1]} : vector<10x128xf32> to vector<1x128xf32>
    %11 = vector.shape_cast %10 : vector<1x128xf32> to vector<128xf32>
    %cst = arith.constant dense<0.000000e+00> : vector<16xf32>
    %12 = vector.multi_reduction <add>, %3, %cst [1] : vector<16x128xf32> to vector<16xf32>
    %13 = vector.shape_cast %12 : vector<16xf32> to vector<16x1xf32>
    %cst_11 = arith.constant 1.280000e+02 : f32
    %14 = vector.broadcast %cst_11 : f32 to vector<16x1xf32>
    %15 = arith.divf %13, %14 : vector<16x1xf32>
    %16 = vector.broadcast %15 : vector<16x1xf32> to vector<16x128xf32>
    %17 = arith.subf %3, %16 : vector<16x128xf32>
    %18 = arith.mulf %17, %17 : vector<16x128xf32>
    %cst_12 = arith.constant dense<0.000000e+00> : vector<16xf32>
    %19 = vector.multi_reduction <add>, %18, %cst_12 [1] : vector<16x128xf32> to vector<16xf32>
    %20 = vector.shape_cast %19 : vector<16xf32> to vector<16x1xf32>
    %cst_13 = arith.constant 1.280000e+02 : f32
    %21 = vector.broadcast %cst_13 : f32 to vector<16x1xf32>
    %22 = arith.divf %20, %21 : vector<16x1xf32>
    %23 = vector.broadcast %15 : vector<16x1xf32> to vector<16x128xf32>
    %24 = arith.subf %3, %23 : vector<16x128xf32>
    %cst_14 = arith.constant 9.99999974E-6 : f32
    %25 = vector.broadcast %cst_14 : f32 to vector<16x1xf32>
    %26 = arith.addf %22, %25 : vector<16x1xf32>
    %27 = math.rsqrt %26 : vector<16x1xf32>
    %28 = vector.broadcast %27 : vector<16x1xf32> to vector<16x128xf32>
    %29 = arith.mulf %24, %28 : vector<16x128xf32>
    %30 = vector.shape_cast %9 : vector<128xf32> to vector<1x128xf32>
    %31 = vector.broadcast %30 : vector<1x128xf32> to vector<16x128xf32>
    %32 = arith.mulf %29, %31 : vector<16x128xf32>
    %33 = vector.shape_cast %11 : vector<128xf32> to vector<1x128xf32>
    %34 = vector.broadcast %33 : vector<1x128xf32> to vector<16x128xf32>
    %35 = arith.addf %32, %34 : vector<16x128xf32>
    %36 = arith.truncf %35 : vector<16x128xf32> to vector<16x128xbf16>
    %37 = vector.extract_strided_slice %0 {offsets = [2, 0], sizes = [1, 128], strides = [1, 1]} : vector<10x128xf32> to vector<1x128xf32>
    %38 = vector.shape_cast %37 : vector<1x128xf32> to vector<128xf32>
    %39 = vector.extract_strided_slice %0 {offsets = [3, 0], sizes = [1, 128], strides = [1, 1]} : vector<10x128xf32> to vector<1x128xf32>
    %40 = vector.shape_cast %39 : vector<1x128xf32> to vector<128xf32>
    %cst_15 = arith.constant dense<0.000000e+00> : vector<32xf32>
    %41 = vector.multi_reduction <add>, %6, %cst_15 [1] : vector<32x128xf32> to vector<32xf32>
    %42 = vector.shape_cast %41 : vector<32xf32> to vector<32x1xf32>
    %cst_16 = arith.constant 1.280000e+02 : f32
    %43 = vector.broadcast %cst_16 : f32 to vector<32x1xf32>
    %44 = arith.divf %42, %43 : vector<32x1xf32>
    %45 = vector.broadcast %44 : vector<32x1xf32> to vector<32x128xf32>
    %46 = arith.subf %6, %45 : vector<32x128xf32>
    %47 = arith.mulf %46, %46 : vector<32x128xf32>
    %cst_17 = arith.constant dense<0.000000e+00> : vector<32xf32>
    %48 = vector.multi_reduction <add>, %47, %cst_17 [1] : vector<32x128xf32> to vector<32xf32>
    %49 = vector.shape_cast %48 : vector<32xf32> to vector<32x1xf32>
    %cst_18 = arith.constant 1.280000e+02 : f32
    %50 = vector.broadcast %cst_18 : f32 to vector<32x1xf32>
    %51 = arith.divf %49, %50 : vector<32x1xf32>
    %52 = vector.broadcast %44 : vector<32x1xf32> to vector<32x128xf32>
    %53 = arith.subf %6, %52 : vector<32x128xf32>
    %cst_19 = arith.constant 9.99999974E-6 : f32
    %54 = vector.broadcast %cst_19 : f32 to vector<32x1xf32>
    %55 = arith.addf %51, %54 : vector<32x1xf32>
    %56 = math.rsqrt %55 : vector<32x1xf32>
    %57 = vector.broadcast %56 : vector<32x1xf32> to vector<32x128xf32>
    %58 = arith.mulf %53, %57 : vector<32x128xf32>
    %59 = vector.shape_cast %38 : vector<128xf32> to vector<1x128xf32>
    %60 = vector.broadcast %59 : vector<1x128xf32> to vector<32x128xf32>
    %61 = arith.mulf %58, %60 : vector<32x128xf32>
    %62 = vector.shape_cast %40 : vector<128xf32> to vector<1x128xf32>
    %63 = vector.broadcast %62 : vector<1x128xf32> to vector<32x128xf32>
    %64 = arith.addf %61, %63 : vector<32x128xf32>
    %65 = arith.truncf %64 : vector<32x128xf32> to vector<32x128xbf16>
    %66 = vector.extract_strided_slice %0 {offsets = [4, 0], sizes = [1, 128], strides = [1, 1]} : vector<10x128xf32> to vector<1x128xf32>
    %67 = vector.shape_cast %66 : vector<1x128xf32> to vector<128xf32>
    %68 = vector.extract_strided_slice %0 {offsets = [5, 0], sizes = [1, 128], strides = [1, 1]} : vector<10x128xf32> to vector<1x128xf32>
    %69 = vector.shape_cast %68 : vector<1x128xf32> to vector<128xf32>
    %cst_20 = arith.constant dense<0.000000e+00> : vector<32xf32>
    %70 = vector.multi_reduction <add>, %7, %cst_20 [1] : vector<32x128xf32> to vector<32xf32>
    %71 = vector.shape_cast %70 : vector<32xf32> to vector<32x1xf32>
    %cst_21 = arith.constant 1.280000e+02 : f32
    %72 = vector.broadcast %cst_21 : f32 to vector<32x1xf32>
    %73 = arith.divf %71, %72 : vector<32x1xf32>
    %74 = vector.broadcast %73 : vector<32x1xf32> to vector<32x128xf32>
    %75 = arith.subf %7, %74 : vector<32x128xf32>
    %76 = arith.mulf %75, %75 : vector<32x128xf32>
    %cst_22 = arith.constant dense<0.000000e+00> : vector<32xf32>
    %77 = vector.multi_reduction <add>, %76, %cst_22 [1] : vector<32x128xf32> to vector<32xf32>
    %78 = vector.shape_cast %77 : vector<32xf32> to vector<32x1xf32>
    %cst_23 = arith.constant 1.280000e+02 : f32
    %79 = vector.broadcast %cst_23 : f32 to vector<32x1xf32>
    %80 = arith.divf %78, %79 : vector<32x1xf32>
    %81 = vector.broadcast %73 : vector<32x1xf32> to vector<32x128xf32>
    %82 = arith.subf %7, %81 : vector<32x128xf32>
    %cst_24 = arith.constant 9.99999974E-6 : f32
    %83 = vector.broadcast %cst_24 : f32 to vector<32x1xf32>
    %84 = arith.addf %80, %83 : vector<32x1xf32>
    %85 = math.rsqrt %84 : vector<32x1xf32>
    %86 = vector.broadcast %85 : vector<32x1xf32> to vector<32x128xf32>
    %87 = arith.mulf %82, %86 : vector<32x128xf32>
    %88 = vector.shape_cast %67 : vector<128xf32> to vector<1x128xf32>
    %89 = vector.broadcast %88 : vector<1x128xf32> to vector<32x128xf32>
    %90 = arith.mulf %87, %89 : vector<32x128xf32>
    %91 = vector.shape_cast %69 : vector<128xf32> to vector<1x128xf32>
    %92 = vector.broadcast %91 : vector<1x128xf32> to vector<32x128xf32>
    %93 = arith.addf %90, %92 : vector<32x128xf32>
    %94 = arith.truncf %93 : vector<32x128xf32> to vector<32x128xbf16>
    %c0_25 = arith.constant 0 : index
    %c0_26 = arith.constant 0 : index
    %95 = vector.load %arg6[%c0_25, %c0_26] : memref<128x128xbf16, #tpu.memory_space<vmem>>, vector<128x128xbf16>
    %cst_27 = arith.constant dense<0.000000e+00> : vector<16x128xf32>
    %96 = tpu.matmul %36, %95, %cst_27 {dimension_numbers = #tpu.dot_dimension_numbers<[1], [0], [0], [1], [0, 0, 1, 1], [], []>} : vector<16x128xbf16>, vector<128x128xbf16>, vector<16x128xf32> -> vector<16x128xf32>
    %97 = vector.extract_strided_slice %0 {offsets = [6, 0], sizes = [1, 128], strides = [1, 1]} : vector<10x128xf32> to vector<1x128xf32>
    %98 = vector.shape_cast %97 : vector<1x128xf32> to vector<128xf32>
    %99 = vector.shape_cast %98 : vector<128xf32> to vector<1x128xf32>
    %100 = vector.broadcast %99 : vector<1x128xf32> to vector<16x128xf32>
    %101 = arith.addf %96, %100 : vector<16x128xf32>
    %c0_28 = arith.constant 0 : index
    %c0_29 = arith.constant 0 : index
    %102 = vector.load %arg7[%c0_28, %c0_29] : memref<128x128xbf16, #tpu.memory_space<vmem>>, vector<128x128xbf16>
    %cst_30 = arith.constant dense<0.000000e+00> : vector<32x128xf32>
    %103 = tpu.matmul %65, %102, %cst_30 {dimension_numbers = #tpu.dot_dimension_numbers<[1], [0], [0], [1], [0, 0, 1, 1], [], []>} : vector<32x128xbf16>, vector<128x128xbf16>, vector<32x128xf32> -> vector<32x128xf32>
    %104 = vector.extract_strided_slice %0 {offsets = [7, 0], sizes = [1, 128], strides = [1, 1]} : vector<10x128xf32> to vector<1x128xf32>
    %105 = vector.shape_cast %104 : vector<1x128xf32> to vector<128xf32>
    %106 = vector.shape_cast %105 : vector<128xf32> to vector<1x128xf32>
    %107 = vector.broadcast %106 : vector<1x128xf32> to vector<32x128xf32>
    %108 = arith.addf %103, %107 : vector<32x128xf32>
    %c0_31 = arith.constant 0 : index
    %c0_32 = arith.constant 0 : index
    %109 = vector.load %arg8[%c0_31, %c0_32] : memref<128x128xbf16, #tpu.memory_space<vmem>>, vector<128x128xbf16>
    %cst_33 = arith.constant dense<0.000000e+00> : vector<32x128xf32>
    %110 = tpu.matmul %94, %109, %cst_33 {dimension_numbers = #tpu.dot_dimension_numbers<[1], [0], [0], [1], [0, 0, 1, 1], [], []>} : vector<32x128xbf16>, vector<128x128xbf16>, vector<32x128xf32> -> vector<32x128xf32>
    %111 = vector.extract_strided_slice %0 {offsets = [8, 0], sizes = [1, 128], strides = [1, 1]} : vector<10x128xf32> to vector<1x128xf32>
    %112 = vector.shape_cast %111 : vector<1x128xf32> to vector<128xf32>
    %113 = vector.shape_cast %112 : vector<128xf32> to vector<1x128xf32>
    %114 = vector.broadcast %113 : vector<1x128xf32> to vector<32x128xf32>
    %115 = arith.addf %110, %114 : vector<32x128xf32>
    %116 = vector.shape_cast %101 : vector<16x128xf32> to vector<2x8x128xf32>
    %117 = vector.extract_strided_slice %116 {offsets = [0, 0, 0], sizes = [2, 8, 32], strides = [1, 1, 1]} : vector<2x8x128xf32> to vector<2x8x32xf32>
    %118 = vector.extract_strided_slice %116 {offsets = [0, 0, 32], sizes = [2, 8, 32], strides = [1, 1, 1]} : vector<2x8x128xf32> to vector<2x8x32xf32>
    %119 = vector.extract_strided_slice %116 {offsets = [0, 0, 64], sizes = [2, 8, 32], strides = [1, 1, 1]} : vector<2x8x128xf32> to vector<2x8x32xf32>
    %120 = vector.extract_strided_slice %116 {offsets = [0, 0, 96], sizes = [2, 8, 32], strides = [1, 1, 1]} : vector<2x8x128xf32> to vector<2x8x32xf32>
    %121 = tpu.concatenate %117, %118, %119, %120 in 0 : vector<2x8x32xf32>, vector<2x8x32xf32>, vector<2x8x32xf32>, vector<2x8x32xf32> -> vector<8x8x32xf32>
    %122 = arith.truncf %121 : vector<8x8x32xf32> to vector<8x8x32xbf16>
    %123 = vector.shape_cast %108 : vector<32x128xf32> to vector<2x16x128xf32>
    %124 = vector.extract_strided_slice %123 {offsets = [0, 0, 0], sizes = [2, 16, 32], strides = [1, 1, 1]} : vector<2x16x128xf32> to vector<2x16x32xf32>
    %125 = vector.extract_strided_slice %123 {offsets = [0, 0, 32], sizes = [2, 16, 32], strides = [1, 1, 1]} : vector<2x16x128xf32> to vector<2x16x32xf32>
    %126 = vector.extract_strided_slice %123 {offsets = [0, 0, 64], sizes = [2, 16, 32], strides = [1, 1, 1]} : vector<2x16x128xf32> to vector<2x16x32xf32>
    %127 = vector.extract_strided_slice %123 {offsets = [0, 0, 96], sizes = [2, 16, 32], strides = [1, 1, 1]} : vector<2x16x128xf32> to vector<2x16x32xf32>
    %128 = tpu.concatenate %124, %125, %126, %127 in 0 : vector<2x16x32xf32>, vector<2x16x32xf32>, vector<2x16x32xf32>, vector<2x16x32xf32> -> vector<8x16x32xf32>
    %129 = arith.truncf %128 : vector<8x16x32xf32> to vector<8x16x32xbf16>
    %130 = vector.shape_cast %115 : vector<32x128xf32> to vector<2x16x128xf32>
    %131 = vector.extract_strided_slice %130 {offsets = [0, 0, 0], sizes = [2, 16, 32], strides = [1, 1, 1]} : vector<2x16x128xf32> to vector<2x16x32xf32>
    %132 = vector.extract_strided_slice %130 {offsets = [0, 0, 32], sizes = [2, 16, 32], strides = [1, 1, 1]} : vector<2x16x128xf32> to vector<2x16x32xf32>
    %133 = vector.extract_strided_slice %130 {offsets = [0, 0, 64], sizes = [2, 16, 32], strides = [1, 1, 1]} : vector<2x16x128xf32> to vector<2x16x32xf32>
    %134 = vector.extract_strided_slice %130 {offsets = [0, 0, 96], sizes = [2, 16, 32], strides = [1, 1, 1]} : vector<2x16x128xf32> to vector<2x16x32xf32>
    %135 = tpu.concatenate %131, %132, %133, %134 in 0 : vector<2x16x32xf32>, vector<2x16x32xf32>, vector<2x16x32xf32>, vector<2x16x32xf32> -> vector<8x16x32xf32>
    %136 = arith.truncf %135 : vector<8x16x32xf32> to vector<8x16x32xbf16>
    "tpu.trace_start"() <{level = 10 : i32, message = "gqd,gkd->gqk"}> : () -> ()
    %cst_34 = arith.constant dense<0.000000e+00> : vector<8x8x16xf32>
    %137 = tpu.matmul %122, %129, %cst_34 {dimension_numbers = #tpu.dot_dimension_numbers<[2], [2], [1], [1], [0, 0, 0, 1, 1, 1], [0], [0]>} : vector<8x8x32xbf16>, vector<8x16x32xbf16>, vector<8x8x16xf32> -> vector<8x8x16xf32>
    "tpu.trace_stop"() : () -> ()
    %cst_35 = arith.constant dense<0xFF800000> : vector<8x8xf32>
    %138 = vector.multi_reduction <maximumf>, %137, %cst_35 [2] : vector<8x8x16xf32> to vector<8x8xf32>
    %139 = vector.shape_cast %138 : vector<8x8xf32> to vector<8x8x1xf32>
    %140 = vector.broadcast %139 : vector<8x8x1xf32> to vector<8x8x16xf32>
    %141 = arith.subf %137, %140 : vector<8x8x16xf32>
    %142 = math.exp %141 : vector<8x8x16xf32>
    %cst_36 = arith.constant dense<0.000000e+00> : vector<8x8xf32>
    %143 = vector.multi_reduction <add>, %142, %cst_36 [2] : vector<8x8x16xf32> to vector<8x8xf32>
    %144 = vector.shape_cast %143 : vector<8x8xf32> to vector<8x8x1xf32>
    %145 = tpu.reciprocal %144 {approx = true} : vector<8x8x1xf32> -> vector<8x8x1xf32>
    %146 = vector.broadcast %145 : vector<8x8x1xf32> to vector<8x8x16xf32>
    %147 = arith.mulf %142, %146 : vector<8x8x16xf32>
    %148 = arith.truncf %147 : vector<8x8x16xf32> to vector<8x8x16xbf16>
    "tpu.trace_start"() <{level = 10 : i32, message = "gqk,gkd->gqd"}> : () -> ()
    %cst_37 = arith.constant dense<0.000000e+00> : vector<8x8x32xf32>
    %149 = tpu.matmul %148, %136, %cst_37 {dimension_numbers = #tpu.dot_dimension_numbers<[2], [1], [1], [2], [0, 0, 0, 1, 1, 2], [0], [0]>} : vector<8x8x16xbf16>, vector<8x16x32xbf16>, vector<8x8x32xf32> -> vector<8x8x32xf32>
    "tpu.trace_stop"() : () -> ()
    %150 = vector.extract_strided_slice %149 {offsets = [0, 0, 0], sizes = [2, 8, 32], strides = [1, 1, 1]} : vector<8x8x32xf32> to vector<2x8x32xf32>
    %151 = vector.shape_cast %150 : vector<2x8x32xf32> to vector<16x32xf32>
    %152 = vector.extract_strided_slice %149 {offsets = [2, 0, 0], sizes = [2, 8, 32], strides = [1, 1, 1]} : vector<8x8x32xf32> to vector<2x8x32xf32>
    %153 = vector.shape_cast %152 : vector<2x8x32xf32> to vector<16x32xf32>
    %154 = vector.extract_strided_slice %149 {offsets = [4, 0, 0], sizes = [2, 8, 32], strides = [1, 1, 1]} : vector<8x8x32xf32> to vector<2x8x32xf32>
    %155 = vector.shape_cast %154 : vector<2x8x32xf32> to vector<16x32xf32>
    %156 = vector.extract_strided_slice %149 {offsets = [6, 0, 0], sizes = [2, 8, 32], strides = [1, 1, 1]} : vector<8x8x32xf32> to vector<2x8x32xf32>
    %157 = vector.shape_cast %156 : vector<2x8x32xf32> to vector<16x32xf32>
    %158 = tpu.concatenate %151, %153, %155, %157 in 1 : vector<16x32xf32>, vector<16x32xf32>, vector<16x32xf32>, vector<16x32xf32> -> vector<16x128xf32>
    %159 = arith.truncf %158 : vector<16x128xf32> to vector<16x128xbf16>
    %c0_38 = arith.constant 0 : index
    %c0_39 = arith.constant 0 : index
    %160 = vector.load %arg9[%c0_38, %c0_39] : memref<128x128xbf16, #tpu.memory_space<vmem>>, vector<128x128xbf16>
    %cst_40 = arith.constant dense<0.000000e+00> : vector<16x128xf32>
    %161 = tpu.matmul %159, %160, %cst_40 {dimension_numbers = #tpu.dot_dimension_numbers<[1], [0], [0], [1], [0, 0, 1, 1], [], []>} : vector<16x128xbf16>, vector<128x128xbf16>, vector<16x128xf32> -> vector<16x128xf32>
    %162 = vector.extract_strided_slice %0 {offsets = [9, 0], sizes = [1, 128], strides = [1, 1]} : vector<10x128xf32> to vector<1x128xf32>
    %163 = vector.shape_cast %162 : vector<1x128xf32> to vector<128xf32>
    %164 = vector.shape_cast %163 : vector<128xf32> to vector<1x128xf32>
    %165 = vector.broadcast %164 : vector<1x128xf32> to vector<16x128xf32>
    %166 = arith.addf %161, %165 : vector<16x128xf32>
    %c0_41 = arith.constant 0 : index
    %c0_42 = arith.constant 0 : index
    %167 = vector.load %arg10[%c0_41, %c0_42] : memref<16x128xf32, #tpu.memory_space<vmem>>, vector<16x128xf32>
    tpu.vector_store %arg10[%c0_41, %c0_42], %166 {strides = array<i32>} : memref<16x128xf32, #tpu.memory_space<vmem>>, vector<16x128xf32>,
    return
  }
  func.func @transform_0(%arg0: i32) -> (i32, i32) {
    %c0_i32 = arith.constant 0 : i32
    %c0_i32_0 = arith.constant 0 : i32
    %c0_i32_1 = arith.constant 0 : i32
    return %c0_i32, %c0_i32_0 : i32, i32
  }
  func.func @transform_1(%arg0: i32) -> (i32, i32) {
    %c0_i32 = arith.constant 0 : i32
    %c0_i32_0 = arith.constant 0 : i32
    %c0_i32_1 = arith.constant 0 : i32
    return %c0_i32, %c0_i32_0 : i32, i32
  }
  func.func @transform_2(%arg0: i32) -> (i32, i32) {
    %c0_i32 = arith.constant 0 : i32
    %c0_i32_0 = arith.constant 0 : i32
    %c0_i32_1 = arith.constant 0 : i32
    return %c0_i32, %c0_i32_0 : i32, i32
  }
  func.func @transform_3(%arg0: i32) -> (i32, i32) {
    %c0_i32 = arith.constant 0 : i32
    %c0_i32_0 = arith.constant 0 : i32
    %c0_i32_1 = arith.constant 0 : i32
    return %c0_i32, %c0_i32_0 : i32, i32
  }
  func.func @transform_4(%arg0: i32) -> (i32, i32) {
    %c0_i32 = arith.constant 0 : i32
    %c0_i32_0 = arith.constant 0 : i32
    %c0_i32_1 = arith.constant 0 : i32
    return %c0_i32, %c0_i32_0 : i32, i32
  }
  func.func @transform_5(%arg0: i32) -> (i32, i32) {
    %c0_i32 = arith.constant 0 : i32
    %c0_i32_0 = arith.constant 0 : i32
    %c0_i32_1 = arith.constant 0 : i32
    return %c0_i32, %c0_i32_0 : i32, i32
  }
  func.func @transform_6(%arg0: i32) -> (i32, i32) {
    %c0_i32 = arith.constant 0 : i32
    %c0_i32_0 = arith.constant 0 : i32
    %c0_i32_1 = arith.constant 0 : i32
    return %c0_i32, %c0_i32_0 : i32, i32
  }
  func.func @transform_7(%arg0: i32) -> (i32, i32) {
    %c0_i32 = arith.constant 0 : i32
    %c0_i32_0 = arith.constant 0 : i32
    %c0_i32_1 = arith.constant 0 : i32
    return %c0_i32, %c0_i32_0 : i32, i32
  }
  func.func @transform_8(%arg0: i32) -> (i32, i32) {
    %c0_i32 = arith.constant 0 : i32
    %c0_i32_0 = arith.constant 0 : i32
    %c0_i32_1 = arith.constant 0 : i32
    return %c0_i32, %c0_i32_0 : i32, i32
  }
  func.func @transform_9(%arg0: i32) -> (i32, i32) {
    %c0_i32 = arith.constant 0 : i32
    %c0_i32_0 = arith.constant 0 : i32
    %c0_i32_1 = arith.constant 0 : i32
    return %c0_i32, %c0_i32_0 : i32, i32
  }
}

</mosaic_0001>

<bundles_post_ra>
// kernel: tpu_custom_call.1
= control target key start
LH: loop header
LB: loop body
LE: loop exit
PB: predicated region body
PF: predicated region fallthrough
CT: control target
= control target key end

     0   :  { %14 = vsyncpa [#allocation3], 0  ;;  %s2884_s0 = inlined_call_operand.hbm [shape: f32[16,128], index: 0, kind: input, shape index: {}]   ;;  %s2885_s1 = inlined_call_operand.hbm [shape: f32[16,128], index: 1, kind: input, shape index: {}]   ;;  %s2886_s2 = inlined_call_operand.hbm [shape: f32[32,128], index: 2, kind: input, shape index: {}]   ;;  %s2887_s3 = inlined_call_operand.hbm [shape: f32[32,128], index: 3, kind: input, shape index: {}]   ;;  %s2888_s4 = inlined_call_operand.hbm [shape: f32[10,128], index: 4, kind: input, shape index: {}]   ;;  %s2889_s5 = inlined_call_operand.hbm [shape: bf16[128,128], index: 5, kind: input, shape index: {}]   ;;  %s2890_s6 = inlined_call_operand.hbm [shape: bf16[128,128], index: 6, kind: input, shape index: {}]   ;;  %s2891_s7 = inlined_call_operand.hbm [shape: bf16[128,128], index: 7, kind: input, shape index: {}]   ;;  %s2892_s8 = inlined_call_operand.hbm [shape: bf16[128,128], index: 8, kind: input, shape index: {}]   ;;  %s2893_s9 = inlined_call_operand.hbm [shape: f32[16,128], index: 9, kind: output, shape index: {}]  }
   0x1   :  { %15 = vsyncpa [#allocation6], 0 }
   0x2   :  { %16 = vsyncpa [#allocation9], 0 }
   0x3   :  { %17 = vsyncpa [#allocation12], 0 }
   0x4   :  { %18 = vsyncpa [#allocation15], 0 }
   0x5   :  { %19 = vsyncpa [#allocation4], 0  ;;  %s2471_s30 = smov [#allocation5]   ;;  %s2472_s11 = smov [#allocation8]  }
   0x6   :  { %s37_s10 = sshll.u32 %s2471_s30, 4  ;;  %s61_s12 = sshll.u32 %s2472_s11, 4  ;;  %s38_s10 = int_to_ptr.vmem [resolvable:$true] %s37_s10  ;;  %s62_s12 = int_to_ptr.vmem [resolvable:$true] %s61_s12 }
   0x7   :  { %s2267_s13 = scalar_lea.vmem %s38_s10, 256  ;;  %p2272_p1 = scmp.lt.s32.totalorder %s38_s10, %s38_s10 }
   0x8   :  { %p2268_p0 = scmp.ne.s32.totalorder %s38_s10, %s2267_s13  ;;  %p2273_p2 = scmp.lt.s32.totalorder %s2267_s13, %s2267_s13 }
   0xa   :  { %p2274_p3 = por %p2273_p2, %p2272_p1 }
   0xc   :  { %p2275_p4 = pnand %p2274_p3, %p2268_p0 }
   0xe   :  { %2278 = shalt.err (!%p2275_p4)
}
   0xf   :  { %s2473_s14 = smov 128   ;;  %s2474_s15 = smov 8  }
  0x10   :  { %43 = dma.hbm_to_vmem [thread:$0]  %s2885_s1, 256, %s38_s10, [#allocation6], %s2473_s14, %s2473_s14, %s2474_s15  }
  0x11   :  { %s2287_s18 = scalar_lea.vmem %s62_s12, 512  ;;  %p2292_p6 = scmp.lt.s32.totalorder %s62_s12, %s62_s12 }
  0x12   :  { %p2288_p5 = scmp.ne.s32.totalorder %s62_s12, %s2287_s18  ;;  %p2293_p7 = scmp.lt.s32.totalorder %s2287_s18, %s2287_s18 }
  0x14   :  { %p2294_p8 = por %p2293_p7, %p2292_p6 }
  0x16   :  { %p2295_p9 = pnand %p2294_p8, %p2288_p5 }
  0x18   :  { %2298 = shalt.err (!%p2295_p9)
}
  0x19   :  { %67 = dma.hbm_to_vmem [thread:$0]  %s2887_s3, 512, %s62_s12, [#allocation9], %s2473_s14, %s2473_s14, %s2474_s15  }
  0x1a   :  { %s2475_s21 = smov [#allocation11]  }
  0x1b   :  { %s85_s22 = sshll.u32 %s2475_s21, 4  ;;  %s86_s22 = int_to_ptr.vmem [resolvable:$true] %s85_s22 }
  0x1c   :  { %s2307_s23 = scalar_lea.vmem %s86_s22, 1024  ;;  %p2312_p11 = scmp.lt.s32.totalorder %s86_s22, %s86_s22 }
  0x1d   :  { %p2308_p10 = scmp.ne.s32.totalorder %s86_s22, %s2307_s23  ;;  %p2313_p12 = scmp.lt.s32.totalorder %s2307_s23, %s2307_s23 }
  0x1f   :  { %p2314_p13 = por %p2313_p12, %p2312_p11 }
  0x21   :  { %p2315_p0 = pnand %p2314_p13, %p2308_p10 }
  0x23   :  { %2318 = shalt.err (!%p2315_p0)
}
  0x24   :  { %s2476_s1 = smov 64   ;;  %s2477_s24 = smov 4  }
  0x25   :  { %91 = dma.hbm_to_vmem [thread:$0]  %s2889_s5, 1024, %s86_s22, [#allocation12], %s2476_s1, %s2476_s1, %s2477_s24  }
  0x26   :  { %s2478_s3 = smov [#allocation14]   ;;  %s2479_s28 = smov [#allocation2]  }
  0x27   :  { %s109_s27 = sshll.u32 %s2478_s3, 4  ;;  %s25_s29 = sshll.u32 %s2479_s28, 4  ;;  %s110_s27 = int_to_ptr.vmem [resolvable:$true] %s109_s27  ;;  %s26_s29 = int_to_ptr.vmem [resolvable:$true] %s25_s29 }
  0x28   :  { %s2327_s30 = scalar_lea.vmem %s110_s27, 1024  ;;  %p2332_p2 = scmp.lt.s32.totalorder %s110_s27, %s110_s27 }
  0x29   :  { %p2328_p1 = scmp.ne.s32.totalorder %s110_s27, %s2327_s30  ;;  %p2333_p3 = scmp.lt.s32.totalorder %s2327_s30, %s2327_s30 }
  0x2b   :  { %p2334_p4 = por %p2333_p3, %p2332_p2 }
  0x2d   :  { %p2335_p5 = pnand %p2334_p4, %p2328_p1 }
  0x2f   :  { %2338 = shalt.err (!%p2335_p5)
}
  0x30   :  { %115 = dma.hbm_to_vmem [thread:$0]  %s2891_s7, 1024, %s110_s27, [#allocation15], %s2476_s1, %s2476_s1, %s2477_s24  }
  0x31   :  { %s2347_s5 = scalar_lea.vmem %s26_s29, 256  ;;  %p2352_p7 = scmp.lt.s32.totalorder %s26_s29, %s26_s29 }
  0x32   :  { %p2348_p6 = scmp.ne.s32.totalorder %s26_s29, %s2347_s5  ;;  %p2353_p8 = scmp.lt.s32.totalorder %s2347_s5, %s2347_s5 }
  0x34   :  { %p2354_p9 = por %p2353_p8, %p2352_p7 }
  0x36   :  { %p2355_p10 = pnand %p2354_p9, %p2348_p6 }
  0x38   :  { %2358 = shalt.err (!%p2355_p10)
}
  0x39   :  { %31 = dma.hbm_to_vmem [thread:$0]  %s2884_s0, 256, %s26_s29, [#allocation3], %s2473_s14, %s2473_s14, %s2474_s15  }
  0x3a   :  { %s2480_s16 = smov [#allocation7]   ;;  %s2481_s18 = smov [#allocation10]  }
  0x3b   :  { %s49_s17 = sshll.u32 %s2480_s16, 4  ;;  %s73_s7 = sshll.u32 %s2481_s18, 4  ;;  %s50_s17 = int_to_ptr.vmem [resolvable:$true] %s49_s17  ;;  %s74_s7 = int_to_ptr.vmem [resolvable:$true] %s73_s7 }
  0x3c   :  { %s2367_s19 = scalar_lea.vmem %s50_s17, 512  ;;  %p2372_p12 = scmp.lt.s32.totalorder %s50_s17, %s50_s17 }
  0x3d   :  { %p2368_p11 = scmp.ne.s32.totalorder %s50_s17, %s2367_s19  ;;  %p2373_p13 = scmp.lt.s32.totalorder %s2367_s19, %s2367_s19 }
  0x3f   :  { %p2374_p0 = por %p2373_p13, %p2372_p12 }
  0x41   :  { %p2375_p1 = pnand %p2374_p0, %p2368_p11 }
  0x43   :  { %2378 = shalt.err (!%p2375_p1)
}
  0x44   :  { %55 = dma.hbm_to_vmem [thread:$0]  %s2886_s2, 512, %s50_s17, [#allocation6], %s2473_s14, %s2473_s14, %s2474_s15  }
  0x45   :  { %s2387_s0 = scalar_lea.vmem %s74_s7, 256  ;;  %p2392_p3 = scmp.lt.s32.totalorder %s74_s7, %s74_s7 }
  0x46   :  { %p2388_p2 = scmp.ne.s32.totalorder %s74_s7, %s2387_s0  ;;  %p2393_p4 = scmp.lt.s32.totalorder %s2387_s0, %s2387_s0 }
  0x48   :  { %p2394_p5 = por %p2393_p4, %p2392_p3 }
  0x4a   :  { %p2395_p6 = pnand %p2394_p5, %p2388_p2 }
  0x4c   :  { %2398 = shalt.err (!%p2395_p6)
}
  0x4d   :  { %79 = dma.hbm_to_vmem [thread:$0]  %s2888_s4, 256, %s74_s7, [#allocation9], %s2473_s14, %s2473_s14, %s2474_s15  }
  0x4e   :  { %s2482_s25 = smov [#allocation13]   ;;  %s2483_s3 = smov [#allocation16]  }
  0x4f   :  { %s97_s26 = sshll.u32 %s2482_s25, 4  ;;  %s121_s2 = sshll.u32 %s2483_s3, 4  ;;  %s98_s26 = int_to_ptr.vmem [resolvable:$true] %s97_s26  ;;  %s122_s2 = int_to_ptr.vmem [resolvable:$true] %s121_s2 }
  0x50   :  { %s2407_s27 = scalar_lea.vmem %s98_s26, 1024  ;;  %p2412_p8 = scmp.lt.s32.totalorder %s98_s26, %s98_s26 }
  0x51   :  { %p2408_p7 = scmp.ne.s32.totalorder %s98_s26, %s2407_s27  ;;  %p2413_p9 = scmp.lt.s32.totalorder %s2407_s27, %s2407_s27 }
  0x53   :  { %p2414_p10 = por %p2413_p9, %p2412_p8 }
  0x55   :  { %p2415_p11 = pnand %p2414_p10, %p2408_p7 }
  0x57   :  { %2418 = shalt.err (!%p2415_p11)
}
  0x58   :  { %103 = dma.hbm_to_vmem [thread:$0]  %s2890_s6, 1024, %s98_s26, [#allocation12], %s2476_s1, %s2476_s1, %s2477_s24  }
  0x59   :  { %s2427_s4 = scalar_lea.vmem %s122_s2, 1024  ;;  %p2432_p13 = scmp.lt.s32.totalorder %s122_s2, %s122_s2 }
  0x5a   :  { %p2428_p12 = scmp.ne.s32.totalorder %s122_s2, %s2427_s4  ;;  %p2433_p0 = scmp.lt.s32.totalorder %s2427_s4, %s2427_s4 }
  0x5c   :  { %p2434_p1 = por %p2433_p0, %p2432_p13 }
  0x5e   :  { %p2435_p2 = pnand %p2434_p1, %p2428_p12 }
  0x60   :  { %2438 = shalt.err (!%p2435_p2)
}
  0x61   :  { %127 = dma.hbm_to_vmem [thread:$0]  %s2892_s8, 1024, %s122_s2, [#allocation15], %s2476_s1, %s2476_s1, %s2477_s24  }
  0x62   :  { %2459 = dma.done.wait [#allocation3], 256  }
  0x63   :  { %2460 = vsyncadd [#allocation3], 4294967040 }
  0x64   :  { %2461 = dma.done.wait [#allocation6], 768  }
  0x65   :  { %2462 = vsyncadd [#allocation6], 4294966528 }
  0x66   :  { %2463 = dma.done.wait [#allocation9], 768  }
  0x67   :  { %2464 = vsyncadd [#allocation9], 4294966528 }
  0x68   :  { %2465 = dma.done.wait [#allocation12], 2048  }
  0x69   :  { %2466 = vsyncadd [#allocation12], 4294965248 }
  0x6a   :  { %2467 = dma.done.wait [#allocation15], 2048  }
  0x6b   :  { %2468 = vsyncadd [#allocation15], 4294965248  ;;  %v2593_v0 = vld [vmem:[#allocation7] sm:$0xff]  ;;  %v2595_v2 = vld [vmem:[#allocation7 + $0x10] sm:$0xff]  ;;  %v2484_v45 = vmov 0.0   ;;  %vm2485_vm0 = vmmov 0  }
  0x6c   :  { %v168_v1 = vld [vmem:[#allocation8] sm:$0xff]  ;;  %v170_v4 = vld [vmem:[#allocation8 + $0x10] sm:$0xff]  ;;  %v2598_v5 = vld [vmem:[#allocation7 + $0x8] sm:$0xff]  ;;  %1896 = vmatprep.subr.bf16.mxu0 %v2484_v45  ;;  %1912 = vmatprep.mubr.msk.bf16.mxu0 %vm2485_vm0, %v2484_v45  ;;  %s2486_s6 = smov 96   ;;  %vm803_vm1 = vcmask 261120   ;;  %s2487_s8 = smov 32  }
  0x6d   :  { %v172_v3 = vadd.f32 %v168_v1, %v2593_v0  ;;  %v169_v6 = vld [vmem:[#allocation8 + $0x8] sm:$0xff]  ;;  %v174_v7 = vadd.f32 %v170_v4, %v2595_v2  ;;  %v2601_v8 = vld [vmem:[#allocation7 + $0x18] sm:$0xff]  ;;  %v158_v10 = vld [vmem:[#allocation2] sm:$0xff]  ;;  %vm1172_vm2 = vcmask 130048   ;;  %vm1639_vm3 = vcmask 523264  }
  0x6e   :  { %v171_v9 = vld [vmem:[#allocation8 + $0x18] sm:$0xff]  ;;  %v173_v11 = vadd.f32 %v169_v6, %v2598_v5  ;;  %v160_v12 = vld [vmem:[#allocation5] sm:$0xff]  ;;  %v159_v13 = vld [vmem:[#allocation2 + $0x8] sm:$0xff]  ;;  %vm1642_vm4 = vcmask 785408  }
  0x6f   :  { %212 = vadd.xlane.f32.xlu0 %v172_v3  ;;  %v161_v14 = vld [vmem:[#allocation5 + $0x8] sm:$0xff]  ;;  %216 = vadd.xlane.f32.xlu1 %v174_v7  ;;  %v175_v15 = vadd.f32 %v171_v9, %v2601_v8  ;;  %v162_v16 = vadd.f32 %v160_v12, %v158_v10  ;;  %v2175_v42 = vld [vmem:[#allocation13 + $0x38] sm:$0xff]   ;;  %v2176_v43 = vld [vmem:[#allocation13 + $0x30] sm:$0xff]  }
  0x70   :  { %v163_v17 = vadd.f32 %v161_v14, %v159_v13  ;;  %1916 = vmatprep.subr.bf16.mxu1 %v2175_v42  ;;  %v2177_v44 = vld [vmem:[#allocation11 + $0x38] sm:$0xff]   ;;  %v2178_v46 = vld [vmem:[#allocation13 + $0x28] sm:$0xff]   ;;  %v2179_v47 = vld [vmem:[#allocation11 + $0x30] sm:$0xff]  }
  0x71   :  { %1917 = vmatpush3.bf16.msra.mxu1 %v2175_v42  ;;  %1897 = vmatpush3.bf16.msra.mxu0 %v2177_v44  ;;  %v2180_v48 = vld [vmem:[#allocation13 + $0x20] sm:$0xff]   ;;  %v2181_v49 = vld [vmem:[#allocation11 + $0x28] sm:$0xff]   ;;  %v2182_v50 = vld [vmem:[#allocation13 + $0x18] sm:$0xff]  }
  0x72   :  { %1918 = vmatprep.subr.bf16.mxu1 %v2176_v43  ;;  %1898 = vmatprep.subr.bf16.mxu0 %v2484_v45  ;;  %v2183_v51 = vld [vmem:[#allocation11 + $0x20] sm:$0xff]   ;;  %v2184_v52 = vld [vmem:[#allocation13 + $0x10] sm:$0xff]   ;;  %v2185_v53 = vld [vmem:[#allocation11 + $0x18] sm:$0xff]  }
  0x73   :  { %214 = vadd.xlane.f32.xlu0 %v173_v11  ;;  %218 = vadd.xlane.f32.xlu1 %v175_v15  ;;  %v2186_v54 = vld [vmem:[#allocation13 + $0x8] sm:$0xff]   ;;  %v2187_v55 = vld [vmem:[#allocation11 + $0x10] sm:$0xff]   ;;  %v2188_v56 = vld [vmem:[#allocation13] sm:$0xff]  }
  0x74   :  { %v2189_v57 = vld [vmem:[#allocation11 + $0x8] sm:$0xff]   ;;  %v2190_v58 = vld [vmem:[#allocation11] sm:$0xff]  }
  0x75   :  { %1919 = vmatpush3.bf16.msra.mxu1 %v2176_v43  ;;  %1899 = vmatpush3.bf16.msra.mxu0 %v2179_v47 }
  0x76   :  { %1920 = vmatprep.subr.bf16.mxu1 %v2178_v46  ;;  %1900 = vmatprep.subr.bf16.mxu0 %v2484_v45 }
  0x77   :  { %176 = vadd.xlane.f32.xlu0 %v162_v16  ;;  %178 = vadd.xlane.f32.xlu1 %v163_v17 }
  0x79   :  { %1921 = vmatpush3.bf16.msra.mxu1 %v2178_v46  ;;  %1901 = vmatpush3.bf16.msra.mxu0 %v2181_v49 }
  0x7a   :  { %1922 = vmatprep.subr.bf16.mxu1 %v2180_v48  ;;  %1902 = vmatprep.subr.bf16.mxu0 %v2484_v45 }
  0x7d   :  { %1923 = vmatpush3.bf16.msra.mxu1 %v2180_v48  ;;  %1903 = vmatpush3.bf16.msra.mxu0 %v2183_v51 }
  0x7e   :  { %1924 = vmatprep.subr.bf16.mxu1 %v2182_v50  ;;  %1904 = vmatprep.subr.bf16.mxu0 %v2484_v45 }
  0x81   :  { %1925 = vmatpush3.bf16.msra.mxu1 %v2182_v50  ;;  %1905 = vmatpush3.bf16.msra.mxu0 %v2185_v53 }
  0x82   :  { %1926 = vmatprep.subr.bf16.mxu1 %v2184_v52  ;;  %1906 = vmatprep.subr.bf16.mxu0 %v2484_v45 }
  0x85   :  { %1927 = vmatpush3.bf16.msra.mxu1 %v2184_v52  ;;  %1907 = vmatpush3.bf16.msra.mxu0 %v2187_v55 }
  0x86   :  { %1928 = vmatprep.subr.bf16.mxu1 %v2186_v54  ;;  %1908 = vmatprep.subr.bf16.mxu0 %v2484_v45 }
  0x89   :  { %1929 = vmatpush3.bf16.msra.mxu1 %v2186_v54  ;;  %1909 = vmatpush3.bf16.msra.mxu0 %v2189_v57 }
  0x8a   :  { %1930 = vmatprep.subr.bf16.mxu1 %v2188_v56  ;;  %1910 = vmatprep.subr.bf16.mxu0 %v2484_v45 }
  0x8d   :  { %1931 = vmatpush3.bf16.msra.mxu1 %v2188_v56  ;;  %1911 = vmatpush3.bf16.msra.mxu0 %v2190_v58 }
  0x8e   :  { %1956 = vmatprep.subr.bf16.mxu1 %v2484_v45 }
  0xf8   :  { %v213_v18 = vpop.xlane.xlu0 %212  ;;  %v217_v20 = vpop.xlane.xlu1 %216 }
  0xf9   :  { %v220_v19 = vmul.f32 0.0078125, %v213_v18  ;;  %v222_v21 = vmul.f32 0.0078125, %v217_v20  ;;  %v2644_v20 = vld [vmem:[#allocation10] sm:$0xff] }
  0xfb   :  { %v2605_v22 = vsub.f32 %v172_v3, %v220_v19  ;;  %v2607_v23 = vsub.f32 %v174_v7, %v222_v21  ;;  %v199_v7 = vlaneseq }
  0xfc   :  { %v215_v24 = vpop.xlane.xlu0 %214  ;;  %v219_v27 = vpop.xlane.xlu1 %218 }
  0xfd   :  { %v221_v25 = vmul.f32 0.0078125, %v215_v24  ;;  %v228_v26 = vmul.f32 %v2605_v22, %v2605_v22  ;;  %v223_v28 = vmul.f32 0.0078125, %v219_v27  ;;  %v230_v30 = vmul.f32 %v2607_v23, %v2607_v23 }
  0xff   :  { %v2611_v29 = vsub.f32 %v173_v11, %v221_v25  ;;  %232 = vadd.xlane.f32.xlu0 %v228_v26  ;;  %v2615_v31 = vsub.f32 %v175_v15, %v223_v28  ;;  %v2641_v15 = vshrl.u32 %v199_v7, 7 }
 0x100   :  { %v177_v32 = vpop.xlane.xlu0 %176  ;;  %v179_v35 = vpop.xlane.xlu1 %178 }
 0x101   :  { %v181_v33 = vmul.f32 0.0078125, %v177_v32  ;;  %v229_v34 = vmul.f32 %v2611_v29, %v2611_v29  ;;  %v182_v36 = vmul.f32 0.0078125, %v179_v35  ;;  %v231_v38 = vmul.f32 %v2615_v31, %v2615_v31 }
 0x102   :  { %v258_v19 = vsub.s32 2, %v2641_v15  ;;  %v266_v26 = vsub.s32 3, %v2641_v15  ;;  %v201_v28 = vsub.s32 0, %v2641_v15  ;;  %v463_v57 = vsub.s32 7, %v2641_v15 }
 0x103   :  { %v2619_v37 = vsub.f32 %v162_v16, %v181_v33  ;;  %234 = vadd.xlane.f32.xlu1 %v229_v34  ;;  %236 = vadd.xlane.f32.xlu0 %v230_v30  ;;  %v2623_v39 = vsub.f32 %v163_v17, %v182_v36  ;;  %v354_v58 = vsub.s32 6, %v2641_v15 }
 0x104   :  { %v259_v25 = vrot.slane %v2644_v20, %v258_v19  ;;  %v267_v34 = vrot.slane %v2644_v20, %v266_v26 }
 0x105   :  { %v185_v40 = vmul.f32 %v2619_v37, %v2619_v37  ;;  %v186_v41 = vmul.f32 %v2623_v39, %v2623_v39 }
 0x107   :  { %238 = vadd.xlane.f32.xlu1 %v231_v38  ;;  %187 = vadd.xlane.f32.xlu0 %v185_v40  ;;  %v207_v40 = vsub.s32 1, %v2641_v15 }
 0x10b   :  { %189 = vadd.xlane.f32.xlu1 %v186_v41  ;;  %274 = vadd.xlane.f32.xlu0 %v2593_v0 }
 0x188   :  { %v233_v59 = vpop.xlane.xlu0 %232 }
 0x189   :  { %v240_v60 = vmul.f32 0.0078125, %v233_v59 }
 0x18b   :  { %v244_v61 = vadd.f32 1e-05, %v240_v60  ;;  %v464_v60 = vrot.slane %v2644_v20, %v463_v57 }
 0x18c   :  { %v235_v62 = vpop.xlane.xlu1 %234  ;;  %v237_v63 = vpop.xlane.xlu0 %236 }
 0x18d   :  { %2207 = vrsqrt.f32 %v244_v61  ;;  %v241_v1 = vmul.f32 0.0078125, %v235_v62  ;;  %v242_v3 = vmul.f32 0.0078125, %v237_v63 }
 0x18f   :  { %v245_v4 = vadd.f32 1e-05, %v241_v1  ;;  %v246_v6 = vadd.f32 1e-05, %v242_v3 }
 0x190   :  { %v239_v9 = vpop.xlane.xlu1 %238  ;;  %v188_v10 = vpop.xlane.xlu0 %187 }
 0x191   :  { %2209 = vrsqrt.f32 %v245_v4  ;;  %v243_v11 = vmul.f32 0.0078125, %v239_v9  ;;  %v191_v12 = vmul.f32 0.0078125, %v188_v10 }
 0x192   :  { %2211 = vrsqrt.f32 %v246_v6 }
 0x193   :  { %v247_v13 = vadd.f32 1e-05, %v243_v11  ;;  %v193_v14 = vadd.f32 1e-05, %v191_v12 }
 0x194   :  { %v190_v16 = vpop.xlane.xlu1 %189 }
 0x195   :  { %2213 = vrsqrt.f32 %v247_v13  ;;  %v192_v17 = vmul.f32 0.0078125, %v190_v16 }
 0x196   :  { %2215 = vrsqrt.f32 %v193_v14 }
 0x197   :  { %v194_v18 = vadd.f32 1e-05, %v192_v17 }
 0x199   :  { %2217 = vrsqrt.f32 %v194_v18 }
 0x19a   :  { %v2208_v21 = vpop.eup %2207 }
 0x19b   :  { %v252_v24 = vmul.f32 %v2208_v21, %v2605_v22  ;;  %v202_v22 = vrot.slane %v2644_v20, %v201_v28 }
 0x19d   :  { %v260_v33 = vmul.f32 %v259_v25, %v252_v24 }
 0x19e   :  { %v2210_v27 = vpop.eup %2209 }
 0x19f   :  { %v2212_v30 = vpop.eup %2211  ;;  %v253_v32 = vmul.f32 %v2210_v27, %v2611_v29  ;;  %v268_v42 = vadd.f32 %v267_v34, %v260_v33  ;;  %v275_v27 = vpop.xlane.xlu0 %274 }
 0x1a0   :  { %v254_v35 = vmul.f32 %v2212_v30, %v2607_v23  ;;  %v208_v23 = vrot.slane %v2644_v20, %v207_v40  ;;  %v282_v30 = vmul.f32 0.0078125, %v275_v27  ;;  %v2191_v27 = vld [vmem:[#allocation14 + $0x38] sm:$0xff]  }
 0x1a1   :  { %v261_v36 = vmul.f32 %v259_v25, %v253_v32  ;;  %1936 = vmatprep.subr.bf16.mxu0 %v2191_v27 }
 0x1a2   :  { %v2214_v38 = vpop.eup %2213  ;;  %v262_v46 = vmul.f32 %v259_v25, %v254_v35  ;;  %v2693_v32 = vsub.f32 %v2593_v0, %v282_v30  ;;  %v2192_v30 = vld [vmem:[#allocation14 + $0x30] sm:$0xff]  }
 0x1a3   :  { %v2216_v41 = vpop.eup %2215  ;;  %v269_v43 = vadd.f32 %v267_v34, %v261_v36  ;;  %v255_v44 = vmul.f32 %v2214_v38, %v2615_v31 }
 0x1a4   :  { %v197_v29 = vmul.f32 %v2216_v41, %v2619_v37  ;;  %v270_v50 = vadd.f32 %v267_v34, %v262_v46  ;;  %v290_v33 = vmul.f32 %v2693_v32, %v2693_v32 }
 0x1a5   :  { %v272_v47 = vpack.c.bf16 %v269_v43, %v268_v42  ;;  %v263_v48 = vmul.f32 %v259_v25, %v255_v44 }
 0x1a6   :  { %v2218_v49 = vpop.eup %2217  ;;  %v203_v53 = vmul.f32 %v202_v22, %v197_v29 }
 0x1a7   :  { %1932 = vmatprep.mubr.bf16.mxu1 %v272_v47  ;;  %v271_v51 = vadd.f32 %v267_v34, %v263_v48  ;;  %v198_v52 = vmul.f32 %v2218_v49, %v2623_v39  ;;  %v355_v39 = vrot.slane %v2644_v20, %v354_v58 }
 0x1a8   :  { %v209_v31 = vadd.f32 %v208_v23, %v203_v53 }
 0x1a9   :  { %v273_v54 = vpack.c.bf16 %v271_v51, %v270_v50  ;;  %v204_v55 = vmul.f32 %v202_v22, %v198_v52 }
 0x1ab   :  { %1933 = vmatmul.mubr.bf16.vlgmr.msra.gmra.mxu1 %v273_v54  ;;  %v210_v56 = vadd.f32 %v208_v23, %v204_v55 }
 0x1ac   :  { %1958 = vmatprep.mubr.msk.bf16.mxu1 %vm2485_vm0, %v2484_v45 }
 0x1ad   :  { %v211_v37 = vpack.c.bf16 %v210_v56, %v209_v31 }
 0x1af   :  { %1913 = vmatmul.mubr.bf16.vlgmr.msra.gmra.mxu0 %v211_v37 }
 0x1b0   :  { %1937 = vmatpush3.bf16.msra.mxu0 %v2191_v27 }
 0x1b1   :  { %1938 = vmatprep.subr.bf16.mxu0 %v2192_v30 }
 0x1b4   :  { %1939 = vmatpush3.bf16.msra.mxu0 %v2192_v30 }
 0x26b   :  { %v1934_v59 = vpop.f32.mrf.mxu1 }
 0x26c   :  { %v556_v1 = vadd.f32 %v1934_v59, %v464_v60 }
 0x26d   :  { %v547_v61 = vpop.f32.mrf.mxu1 }
 0x26e   :  { %v548_v7 = vadd.f32 %v547_v61, %v464_v60 }
 0x26f   :  { %v438_v62 = vpop.f32.mrf.mxu0  ;;  %v1935_v63 = vpop.f32.mrf.mxu1 }
 0x270   :  { %v439_v3 = vadd.f32 %v438_v62, %v355_v39  ;;  %v559_v12 = vadd.f32 %v1935_v63, %v464_v60 }
 0x271   :  { %v1914_v4 = vpop.f32.mrf.mxu0  ;;  %v550_v6 = vpop.f32.mrf.mxu1 }
 0x272   :  { %v551_v9 = vadd.f32 %v550_v6, %v464_v60  ;;  %v2095_v10 = vpack.i.bf16 %v556_v1, %v439_v3  ;;  %v748_v21 = vpack.c.bf16 %v559_v12, %v556_v1  ;;  %v699_v24 = vpack.c.bf16 %v439_v3, %v439_v3 }
 0x273   :  { %v441_v11 = vpop.f32.mrf.mxu0 }
 0x274   :  { %v442_v13 = vadd.f32 %v441_v11, %v355_v39  ;;  %2096 = vrot.lane.b32.xlu0 %v2095_v10, %s2476_s1  ;;  %2091 = vrot.lane.b32.xlu1 %v2095_v10, %s2486_s6  ;;  %v747_v14 = vpack.c.bf16 %v551_v9, %v548_v7  ;;  %v2110_v18 = vpack.i.bf16 %v551_v9, %v548_v7  ;;  %v854_v25 = vsel %vm803_vm1, %v748_v21, 0 }
 0x275   :  { %v1915_v16 = vpop.f32.mrf.mxu0 }
 0x276   :  { %v808_v17 = vsel %vm803_vm1, %v747_v14, 0  ;;  %v2100_v19 = vpack.i.bf16 %v442_v13, %v559_v12  ;;  %v700_v26 = vpack.c.bf16 %v442_v13, %v442_v13 }
 0x277   :  { %1957 = vmatpush3.bf16.xpose.msra.mxu1 %v808_v17 }
 0x278   :  { %2111 = vrot.lane.b32.xlu0 %v2110_v18, %s2486_s6  ;;  %2101 = vrot.lane.b32.xlu1 %v2100_v19, %s2486_s6 }
 0x279   :  { %1962 = vmatprep.subr.bf16.mxu1 %v2484_v45 }
 0x27c   :  { %2106 = vrot.lane.b32.xlu1 %v2100_v19, %s2476_s1 }
 0x27e   :  { %1959 = vmatmul.mubr.msk.bf16.vlgmr.msra.gmra.mxu1 %vm803_vm1, %v699_v24 }
 0x27f   :  { %1963 = vmatpush3.bf16.xpose.msra.mxu1 %v854_v25  ;;  %1964 = vmatprep.mubr.msk.bf16.mxu1 %vm2485_vm0, %v2484_v45 }
 0x280   :  { %2116 = vrot.lane.b32.xlu1 %v2110_v18, %s2476_s1  ;;  %1968 = vmatprep.subr.bf16.mxu1 %v2484_v45 }
 0x286   :  { %1965 = vmatmul.mubr.msk.bf16.vlgmr.msra.gmra.mxu1 %vm803_vm1, %v700_v26 }
 0x287   :  { %1970 = vmatprep.mubr.msk.bf16.mxu1 %vm2485_vm0, %v2484_v45 }
 0x297   :  { %278 = vadd.xlane.f32.xlu0 %v2595_v2 }
 0x29b   :  { %280 = vadd.xlane.f32.xlu0 %v2601_v8 }
 0x2a4   :  { %276 = vadd.xlane.f32.xlu1 %v2598_v5 }
 0x2b1   :  { %2121 = vrot.lane.b32.xlu0 %v2110_v18, %s2487_s8 }
 0x2b5   :  { %2126 = vrot.lane.b32.xlu1 %v2095_v10, %s2487_s8 }
 0x2b9   :  { %741 = vrot.lane.b32.xlu1 %v559_v12, %s2487_s8 }
 0x2bd   :  { %695 = vrot.lane.b32.xlu1 %v442_v13, %s2487_s8 }
 0x2d0   :  { %294 = vadd.xlane.f32.xlu0 %v290_v33 }
 0x2e6   :  { %v2097_v34 = vpop.permute.xlu0 %2096  ;;  %v2092_v35 = vpop.permute.xlu1 %2091 }
 0x2e7   :  { %v2094_v29 = vunpack.i.h.bf16 %v2092_v35  ;;  %v2093_v47 = vunpack.i.l.bf16 %v2092_v35  ;;  %v2099_v56 = vunpack.i.h.bf16 %v2097_v34  ;;  %v2098_v37 = vunpack.i.l.bf16 %v2097_v34 }
 0x2e9   :  { %v701_v49 = vpack.c.bf16 %v2093_v47, %v2093_v47  ;;  %v703_v58 = vpack.c.bf16 %v2098_v37, %v2098_v37 }
 0x2ea   :  { %v2112_v36 = vpop.permute.xlu0 %2111  ;;  %v2102_v38 = vpop.permute.xlu1 %2101 }
 0x2eb   :  { %v2114_v22 = vunpack.i.h.bf16 %v2112_v36  ;;  %v2113_v41 = vunpack.i.l.bf16 %v2112_v36  ;;  %v2103_v44 = vunpack.i.l.bf16 %v2102_v38  ;;  %v2104_v52 = vunpack.i.h.bf16 %v2102_v38  ;;  %v2193_v38 = vld [vmem:[#allocation14 + $0x28] sm:$0xff]  }
 0x2ec   :  { %1940 = vmatprep.subr.bf16.mxu0 %v2193_v38 }
 0x2ed   :  { %v749_v42 = vpack.c.bf16 %v2114_v22, %v2113_v41  ;;  %v750_v0 = vpack.c.bf16 %v2103_v44, %v2094_v29  ;;  %v702_v54 = vpack.c.bf16 %v2104_v52, %v2104_v52  ;;  %1941 = vmatpush3.bf16.msra.mxu0 %v2193_v38  ;;  %v2194_v41 = vld [vmem:[#allocation14 + $0x20] sm:$0xff]  }
 0x2ee   :  { %v2107_v43 = vpop.permute.xlu1 %2106  ;;  %1942 = vmatprep.subr.bf16.mxu0 %v2194_v41 }
 0x2ef   :  { %v900_v46 = vsel %vm803_vm1, %v749_v42, 0  ;;  %v946_v51 = vsel %vm803_vm1, %v750_v0, 0  ;;  %v2108_v55 = vunpack.i.l.bf16 %v2107_v43  ;;  %v2109_v60 = vunpack.i.h.bf16 %v2107_v43 }
 0x2f0   :  { %1969 = vmatpush3.bf16.xpose.msra.mxu1 %v900_v46  ;;  %v2195_v46 = vld [vmem:[#allocation14 + $0x18] sm:$0xff]  }
 0x2f1   :  { %1974 = vmatprep.subr.bf16.mxu1 %v2484_v45  ;;  %v752_v57 = vpack.c.bf16 %v2108_v55, %v2099_v56  ;;  %v704_v39 = vpack.c.bf16 %v2109_v60, %v2109_v60  ;;  %1943 = vmatpush3.bf16.msra.mxu0 %v2194_v41 }
 0x2f2   :  { %v2117_v48 = vpop.permute.xlu1 %2116  ;;  %1944 = vmatprep.subr.bf16.mxu0 %v2195_v46 }
 0x2f3   :  { %v2119_v23 = vunpack.i.h.bf16 %v2117_v48  ;;  %v2118_v50 = vunpack.i.l.bf16 %v2117_v48  ;;  %v1038_v59 = vsel %vm803_vm1, %v752_v57, 0  ;;  %v2196_v48 = vld [vmem:[#allocation14 + $0x10] sm:$0xff]  }
 0x2f5   :  { %v751_v53 = vpack.c.bf16 %v2119_v23, %v2118_v50  ;;  %1945 = vmatpush3.bf16.msra.mxu0 %v2195_v46  ;;  %v2198_v23 = vld [vmem:[#allocation14] sm:$0xff]  }
 0x2f6   :  { %1946 = vmatprep.subr.bf16.mxu0 %v2196_v48 }
 0x2f7   :  { %1971 = vmatmul.mubr.msk.bf16.vlgmr.msra.gmra.mxu1 %vm803_vm1, %v701_v49  ;;  %v992_v31 = vsel %vm803_vm1, %v751_v53, 0  ;;  %v2197_v49 = vld [vmem:[#allocation14 + $0x8] sm:$0xff]  }
 0x2f8   :  { %1975 = vmatpush3.bf16.xpose.msra.mxu1 %v946_v51  ;;  %1976 = vmatprep.mubr.msk.bf16.mxu1 %vm2485_vm0, %v2484_v45 }
 0x2f9   :  { %1980 = vmatprep.subr.bf16.mxu1 %v2484_v45  ;;  %1947 = vmatpush3.bf16.msra.mxu0 %v2196_v48 }
 0x2fa   :  { %1948 = vmatprep.subr.bf16.mxu0 %v2197_v49 }
 0x2fd   :  { %1949 = vmatpush3.bf16.msra.mxu0 %v2197_v49 }
 0x2fe   :  { %1950 = vmatprep.subr.bf16.mxu0 %v2198_v23 }
 0x2ff   :  { %1977 = vmatmul.mubr.msk.bf16.vlgmr.msra.gmra.mxu1 %vm803_vm1, %v702_v54 }
 0x300   :  { %1981 = vmatpush3.bf16.xpose.msra.mxu1 %v992_v31  ;;  %1982 = vmatprep.mubr.msk.bf16.mxu1 %vm2485_vm0, %v2484_v45 }
 0x301   :  { %1986 = vmatprep.subr.bf16.mxu1 %v2484_v45  ;;  %1951 = vmatpush3.bf16.msra.mxu0 %v2198_v23 }
 0x302   :  { %2004 = vmatprep.subr.bf16.mxu0 %v2484_v45 }
 0x307   :  { %1983 = vmatmul.mubr.msk.bf16.vlgmr.msra.gmra.mxu1 %vm803_vm1, %v703_v58 }
 0x308   :  { %1987 = vmatpush3.bf16.xpose.msra.mxu1 %v1038_v59  ;;  %1988 = vmatprep.mubr.msk.bf16.mxu1 %vm2485_vm0, %v2484_v45 }
 0x309   :  { %1992 = vmatprep.subr.bf16.mxu1 %v2484_v45 }
 0x30f   :  { %1989 = vmatmul.mubr.msk.bf16.vlgmr.msra.gmra.mxu1 %vm803_vm1, %v704_v39 }
 0x310   :  { %1994 = vmatprep.mubr.msk.bf16.mxu1 %vm2485_vm0, %v2484_v45 }
 0x320   :  { %v279_v61 = vpop.xlane.xlu0 %278 }
 0x321   :  { %v284_v62 = vmul.f32 0.0078125, %v279_v61 }
 0x323   :  { %v2718_v63 = vsub.f32 %v2595_v2, %v284_v62 }
 0x324   :  { %v281_v1 = vpop.xlane.xlu0 %280 }
 0x325   :  { %v285_v3 = vmul.f32 0.0078125, %v281_v1  ;;  %v292_v4 = vmul.f32 %v2718_v63, %v2718_v63 }
 0x327   :  { %v2723_v6 = vsub.f32 %v2601_v8, %v285_v3  ;;  %298 = vadd.xlane.f32.xlu0 %v292_v4 }
 0x328   :  { %v2122_v7 = vpop.permute.xlu0 %2121 }
 0x329   :  { %v2124_v9 = vunpack.i.h.bf16 %v2122_v7  ;;  %v2123_v10 = vunpack.i.l.bf16 %v2122_v7  ;;  %v293_v11 = vmul.f32 %v2723_v6, %v2723_v6 }
 0x32b   :  { %v753_v12 = vpack.c.bf16 %v2124_v9, %v2123_v10  ;;  %300 = vadd.xlane.f32.xlu0 %v293_v11 }
 0x32d   :  { %v277_v13 = vpop.xlane.xlu1 %276  ;;  %v1084_v2 = vsel %vm803_vm1, %v753_v12, 0 }
 0x32e   :  { %v283_v14 = vmul.f32 0.0078125, %v277_v13  ;;  %1993 = vmatpush3.bf16.xpose.msra.mxu1 %v1084_v2  ;;  %v320_v2 = vsub.s32 4, %v2641_v15 }
 0x32f   :  { %1998 = vmatprep.subr.bf16.mxu1 %v2484_v45 }
 0x330   :  { %v2730_v16 = vsub.f32 %v2598_v5, %v283_v14 }
 0x331   :  { %v2127_v8 = vpop.permute.xlu1 %2126 }
 0x332   :  { %v2128_v17 = vunpack.i.l.bf16 %v2127_v8  ;;  %v291_v18 = vmul.f32 %v2730_v16, %v2730_v16  ;;  %v2129_v19 = vunpack.i.h.bf16 %v2127_v8 }
 0x334   :  { %v705_v21 = vpack.c.bf16 %v2128_v17, %v2128_v17  ;;  %296 = vadd.xlane.f32.xlu1 %v291_v18 }
 0x335   :  { %v742_v24 = vpop.permute.xlu1 %741 }
 0x336   :  { %v754_v25 = vpack.c.bf16 %v742_v24, %v2129_v19  ;;  %1995 = vmatmul.mubr.msk.bf16.vlgmr.msra.gmra.mxu1 %vm803_vm1, %v705_v21  ;;  %v321_v24 = vrot.slane %v2644_v20, %v320_v2 }
 0x337   :  { %2000 = vmatprep.mubr.msk.bf16.mxu1 %vm2485_vm0, %v2484_v45 }
 0x338   :  { %v1130_v26 = vsel %vm803_vm1, %v754_v25, 0  ;;  %v328_v25 = vsub.s32 5, %v2641_v15 }
 0x339   :  { %1999 = vmatpush3.bf16.xpose.msra.mxu1 %v1130_v26  ;;  %v696_v5 = vpop.permute.xlu1 %695 }
 0x33a   :  { %2010 = vmatprep.subr.bf16.mxu1 %v2484_v45  ;;  %v706_v33 = vpack.c.bf16 %v696_v5, %v696_v5 }
 0x33e   :  { %v2739_v34 = vpop.f32.mrf.mxu1 }
 0x33f   :  { %v1173_v35 = vsel %vm1172_vm2, %v2739_v34, -inf }
 0x340   :  { %1174 = vmax.xlane.f32.xlu0 %v1173_v35  ;;  %v1960_v36 = vpop.f32.mrf.mxu1  ;;  %2001 = vmatmul.mubr.msk.bf16.vlgmr.msra.gmra.mxu1 %vm803_vm1, %v706_v33 }
 0x341   :  { %2012 = vmatprep.mubr.msk.bf16.mxu1 %vm2485_vm0, %v2484_v45 }
 0x342   :  { %v847_v22 = vpop.f32.mrf.mxu1 }
 0x344   :  { %v1961_v42 = vpop.f32.mrf.mxu1 }
 0x346   :  { %v2746_v43 = vpop.f32.mrf.mxu1 }
 0x347   :  { %v1176_v44 = vsel %vm1172_vm2, %v2746_v43, -inf }
 0x348   :  { %1177 = vmax.xlane.f32.xlu1 %v1176_v44  ;;  %v1966_v29 = vpop.f32.mrf.mxu1 }
 0x34a   :  { %v893_v47 = vpop.f32.mrf.mxu1 }
 0x34c   :  { %v1967_v0 = vpop.f32.mrf.mxu1 }
 0x359   :  { %v295_v50 = vpop.xlane.xlu0 %294 }
 0x35a   :  { %v302_v52 = vmul.f32 0.0078125, %v295_v50 }
 0x35c   :  { %v306_v37 = vadd.f32 1e-05, %v302_v52 }
 0x3b0   :  { %v299_v51 = vpop.xlane.xlu0 %298 }
 0x3b1   :  { %v304_v54 = vmul.f32 0.0078125, %v299_v51 }
 0x3b3   :  { %v308_v58 = vadd.f32 1e-05, %v304_v54 }
 0x3b4   :  { %v301_v53 = vpop.xlane.xlu0 %300 }
 0x3b5   :  { %v305_v55 = vmul.f32 0.0078125, %v301_v53 }
 0x3b7   :  { %v309_v31 = vadd.f32 1e-05, %v305_v55  ;;  %v2751_v56 = vpop.f32.mrf.mxu1 }
 0x3b8   :  { %v1179_v57 = vsel %vm1172_vm2, %v2751_v56, -inf }
 0x3b9   :  { %1180 = vmax.xlane.f32.xlu0 %v1179_v57  ;;  %v1972_v59 = vpop.f32.mrf.mxu1  ;;  %2219 = vrsqrt.f32 %v309_v31 }
 0x3ba   :  { %2221 = vrsqrt.f32 %v306_v37 }
 0x3bb   :  { %v939_v60 = vpop.f32.mrf.mxu1  ;;  %2223 = vrsqrt.f32 %v308_v58 }
 0x3bd   :  { %v297_v39 = vpop.xlane.xlu1 %296  ;;  %v1973_v61 = vpop.f32.mrf.mxu1 }
 0x3be   :  { %v303_v62 = vmul.f32 0.0078125, %v297_v39 }
 0x3bf   :  { %v2755_v1 = vpop.f32.mrf.mxu1 }
 0x3c0   :  { %v307_v3 = vadd.f32 1e-05, %v303_v62  ;;  %v1182_v4 = vsel %vm1172_vm2, %v2755_v1, -inf }
 0x3c1   :  { %1183 = vmax.xlane.f32.xlu1 %v1182_v4  ;;  %v1978_v7 = vpop.f32.mrf.mxu1 }
 0x3c2   :  { %2225 = vrsqrt.f32 %v307_v3 }
 0x3c3   :  { %v985_v9 = vpop.f32.mrf.mxu1 }
 0x3c5   :  { %v1979_v10 = vpop.f32.mrf.mxu1 }
 0x3c6   :  { %v2220_v12 = vpop.eup %2219 }
 0x3c7   :  { %v2759_v11 = vpop.f32.mrf.mxu1  ;;  %v2222_v14 = vpop.eup %2221  ;;  %v317_v19 = vmul.f32 %v2220_v12, %v2723_v6  ;;  %v329_v6 = vrot.slane %v2644_v20, %v328_v25 }
 0x3c8   :  { %v1185_v13 = vsel %vm1172_vm2, %v2759_v11, -inf  ;;  %v2224_v17 = vpop.eup %2223  ;;  %v314_v21 = vmul.f32 %v2222_v14, %v2693_v32 }
 0x3c9   :  { %1186 = vmax.xlane.f32.xlu0 %v1185_v13  ;;  %v1984_v8 = vpop.f32.mrf.mxu1  ;;  %v316_v27 = vmul.f32 %v2224_v17, %v2718_v63  ;;  %v325_v33 = vmul.f32 %v321_v24, %v317_v19 }
 0x3ca   :  { %v322_v38 = vmul.f32 %v321_v24, %v314_v21 }
 0x3cb   :  { %v1031_v18 = vpop.f32.mrf.mxu1  ;;  %v324_v22 = vmul.f32 %v321_v24, %v316_v27  ;;  %v333_v44 = vadd.f32 %v329_v6, %v325_v33 }
 0x3cc   :  { %v330_v46 = vadd.f32 %v329_v6, %v322_v38  ;;  %v2794_v18 = vld [vmem:[#allocation10 + $0x8] sm:$0x3] }
 0x3cd   :  { %v1985_v26 = vpop.f32.mrf.mxu1  ;;  %v332_v47 = vadd.f32 %v329_v6, %v324_v22  ;;  %v581_v19 = vrot.slane %v2794_v18, %v201_v28 }
 0x3cf   :  { %v2226_v5 = vpop.eup %2225  ;;  %v2769_v30 = vpop.f32.mrf.mxu1  ;;  %v335_v48 = vpack.c.bf16 %v333_v44, %v332_v47 }
 0x3d0   :  { %v1188_v35 = vsel %vm1172_vm2, %v2769_v30, -inf  ;;  %v315_v36 = vmul.f32 %v2226_v5, %v2730_v16  ;;  %v1175_v16 = vpop.xlane.xlu0 %1174 }
 0x3d1   :  { %1189 = vmax.xlane.f32.xlu1 %v1188_v35  ;;  %v1990_v32 = vpop.f32.mrf.mxu1  ;;  %v1197_v20 = vsub.f32 %v2739_v34, %v1175_v16  ;;  %v1178_v23 = vpop.xlane.xlu1 %1177 }
 0x3d2   :  { %v323_v41 = vmul.f32 %v321_v24, %v315_v36  ;;  %v1198_v50 = vsub.f32 %v2746_v43, %v1178_v23 }
 0x3d3   :  { %v1077_v42 = vpop.f32.mrf.mxu1  ;;  %v1205_v49 = vmul.f32 1.442695, %v1197_v20 }
 0x3d4   :  { %v331_v63 = vadd.f32 %v329_v6, %v323_v41  ;;  %v1207_v51 = vmul.f32 1.442695, %v1198_v50 }
 0x3d5   :  { %v1991_v29 = vpop.f32.mrf.mxu1  ;;  %2227 = vpow2.f32 %v1205_v49 }
 0x3d6   :  { %v334_v0 = vpack.c.bf16 %v331_v63, %v330_v46  ;;  %2229 = vpow2.f32 %v1207_v51 }
 0x3d8   :  { %1952 = vmatprep.mubr.bf16.mxu0 %v334_v0 }
 0x3d9   :  { %1953 = vmatmul.mubr.bf16.vlgmr.msra.gmra.mxu0 %v335_v48 }
 0x3da   :  { %2006 = vmatprep.mubr.msk.bf16.mxu0 %vm2485_vm0, %v2484_v45 }
 0x3e2   :  { %v2228_v54 = vpop.eup %2227 }
 0x3e3   :  { %v1221_v37 = vsel %vm1172_vm2, %v2228_v54, 0.0  ;;  %v2230_v58 = vpop.eup %2229 }
 0x3e4   :  { %v1224_v39 = vsel %vm1172_vm2, %v2230_v58, 0.0 }
 0x3f6   :  { %v2779_v52 = vpop.f32.mrf.mxu1 }
 0x3f7   :  { %v1191_v53 = vsel %vm1172_vm2, %v2779_v52, -inf }
 0x3f8   :  { %1192 = vmax.xlane.f32.xlu0 %v1191_v53  ;;  %v1996_v55 = vpop.f32.mrf.mxu1 }
 0x3fa   :  { %v1123_v31 = vpop.f32.mrf.mxu1 }
 0x3fc   :  { %1222 = vadd.xlane.f32.xlu0 %v1221_v37  ;;  %v1997_v34 = vpop.f32.mrf.mxu1 }
 0x400   :  { %v2784_v57 = vpop.f32.mrf.mxu1 }
 0x401   :  { %v1194_v43 = vsel %vm1172_vm2, %v2784_v57, -inf }
 0x402   :  { %1195 = vmax.xlane.f32.xlu1 %v1194_v43  ;;  %v2002_v59 = vpop.f32.mrf.mxu1 }
 0x404   :  { %v1169_v60 = vpop.f32.mrf.mxu1 }
 0x406   :  { %1225 = vadd.xlane.f32.xlu1 %v1224_v39  ;;  %v2003_v61 = vpop.f32.mrf.mxu1 }
 0x442   :  { %v1181_v62 = vpop.xlane.xlu0 %1180 }
 0x443   :  { %v1199_v3 = vsub.f32 %v2751_v56, %v1181_v62 }
 0x445   :  { %v1209_v4 = vmul.f32 1.442695, %v1199_v3 }
 0x447   :  { %2231 = vpow2.f32 %v1209_v4 }
 0x44a   :  { %v1184_v10 = vpop.xlane.xlu1 %1183 }
 0x44b   :  { %v1200_v0 = vsub.f32 %v2755_v1, %v1184_v10 }
 0x44d   :  { %v1211_v48 = vmul.f32 1.442695, %v1200_v0 }
 0x452   :  { %v1187_v12 = vpop.xlane.xlu0 %1186 }
 0x453   :  { %v1201_v46 = vsub.f32 %v2759_v11, %v1187_v12 }
 0x454   :  { %v2790_v7 = vpop.eup %2231 }
 0x455   :  { %v1227_v9 = vsel %vm1172_vm2, %v2790_v7, 0.0  ;;  %v1213_v63 = vmul.f32 1.442695, %v1201_v46 }
 0x456   :  { %1228 = vadd.xlane.f32.xlu0 %v1227_v9 }
 0x45a   :  { %v1190_v13 = vpop.xlane.xlu1 %1189 }
 0x45b   :  { %v1202_v16 = vsub.f32 %v2769_v30, %v1190_v13 }
 0x45d   :  { %v1215_v20 = vmul.f32 1.442695, %v1202_v16 }
 0x481   :  { %v1193_v2 = vpop.xlane.xlu0 %1192 }
 0x482   :  { %v1203_v29 = vsub.f32 %v2779_v52, %v1193_v2 }
 0x484   :  { %v1217_v47 = vmul.f32 1.442695, %v1203_v29 }
 0x485   :  { %v1223_v8 = vpop.xlane.xlu0 %1222 }
 0x486   :  { %2233 = vrcp.f32 %v1223_v8 }
 0x48b   :  { %v1196_v14 = vpop.xlane.xlu1 %1195 }
 0x48c   :  { %v1204_v49 = vsub.f32 %v2784_v57, %v1196_v14 }
 0x48e   :  { %v1219_v11 = vmul.f32 1.442695, %v1204_v49 }
 0x48f   :  { %v1226_v17 = vpop.xlane.xlu1 %1225 }
 0x490   :  { %2235 = vrcp.f32 %v1226_v17 }
 0x491   :  { %2237 = vpow2.f32 %v1213_v63 }
 0x492   :  { %2239 = vpow2.f32 %v1217_v47 }
 0x493   :  { %v2234_v24 = vpop.eup %2233  ;;  %2241 = vpow2.f32 %v1211_v48 }
 0x494   :  { %v1253_v22 = vmul.f32 %v2234_v24, %v2228_v54  ;;  %2243 = vpow2.f32 %v1215_v20 }
 0x495   :  { %2245 = vpow2.f32 %v1219_v11 }
 0x496   :  { %v1261_v28 = vpack.c.bf16 %v1253_v22, %v1253_v22 }
 0x499   :  { %v1954_v56 = vpop.f32.mrf.mxu0 }
 0x49a   :  { %v673_v27 = vadd.f32 %v1954_v56, %v581_v19 }
 0x49b   :  { %v664_v21 = vpop.f32.mrf.mxu0 }
 0x49c   :  { %v665_v36 = vadd.f32 %v664_v21, %v581_v19 }
 0x49d   :  { %v1955_v25 = vpop.f32.mrf.mxu0  ;;  %v2236_v26 = vpop.eup %2235 }
 0x49e   :  { %v676_v5 = vadd.f32 %v1955_v25, %v581_v19  ;;  %v1254_v35 = vmul.f32 %v2236_v26, %v2230_v58  ;;  %v2238_v23 = vpop.eup %2237 }
 0x49f   :  { %v667_v33 = vpop.f32.mrf.mxu0  ;;  %v1233_v50 = vsel %vm1172_vm2, %v2238_v23, 0.0  ;;  %v2240_v51 = vpop.eup %2239 }
 0x4a0   :  { %v668_v38 = vadd.f32 %v667_v33, %v581_v19  ;;  %v2135_v6 = vpack.i.bf16 %v676_v5, %v673_v27  ;;  %v796_v32 = vpack.c.bf16 %v676_v5, %v673_v27  ;;  %v1262_v44 = vpack.c.bf16 %v1254_v35, %v1254_v35  ;;  %v2818_v1 = vpop.eup %2241 }
 0x4a1   :  { %v1239_v52 = vsel %vm1172_vm2, %v2240_v51, 0.0  ;;  %v1230_v30 = vsel %vm1172_vm2, %v2818_v1, 0.0  ;;  %v2822_v53 = vpop.eup %2243 }
 0x4a2   :  { %2136 = vrot.lane.b32.xlu1 %v2135_v6, %s2486_s6  ;;  %2011 = vmatpush3.bf16.msra.mxu1 %v796_v32  ;;  %v2130_v41 = vpack.i.bf16 %v668_v38, %v665_v36  ;;  %v795_v42 = vpack.c.bf16 %v668_v38, %v665_v36  ;;  %v1236_v54 = vsel %vm1172_vm2, %v2822_v53, 0.0  ;;  %v2826_v55 = vpop.eup %2245 }
 0x4a3   :  { %2022 = vmatprep.subr.bf16.mxu1 %v2484_v45  ;;  %v1242_v31 = vsel %vm1172_vm2, %v2826_v55, 0.0 }
 0x4a4   :  { %2131 = vrot.lane.b32.xlu0 %v2130_v41, %s2486_s6  ;;  %2005 = vmatpush3.bf16.msra.mxu0 %v795_v42 }
 0x4a5   :  { %2013 = vmatmul.mubr.msk.bf16.vlgmr.msra.gmra.mxu1 %vm1172_vm2, %v1262_v44  ;;  %2016 = vmatprep.subr.bf16.mxu0 %v2484_v45 }
 0x4a6   :  { %2141 = vrot.lane.b32.xlu1 %v2130_v41, %s2476_s1  ;;  %2024 = vmatprep.mubr.msk.bf16.mxu1 %vm2485_vm0, %v2484_v45 }
 0x4a7   :  { %2007 = vmatmul.mubr.msk.bf16.vlgmr.msra.gmra.mxu0 %vm1172_vm2, %v1261_v28 }
 0x4a8   :  { %2018 = vmatprep.mubr.msk.bf16.mxu0 %vm2485_vm0, %v2484_v45 }
 0x4aa   :  { %2146 = vrot.lane.b32.xlu1 %v2135_v6, %s2476_s1 }
 0x4c3   :  { %1234 = vadd.xlane.f32.xlu0 %v1233_v50 }
 0x4c7   :  { %1240 = vadd.xlane.f32.xlu0 %v1239_v52 }
 0x4ce   :  { %1231 = vadd.xlane.f32.xlu1 %v1230_v30 }
 0x4d2   :  { %1237 = vadd.xlane.f32.xlu1 %v1236_v54  ;;  %v2199_v54 = vld [vmem:[#allocation16 + $0x38] sm:$0xff]  }
 0x4d6   :  { %1243 = vadd.xlane.f32.xlu1 %v1242_v31  ;;  %v2201_v31 = vld [vmem:[#allocation16 + $0x28] sm:$0xff]  }
 0x4dd   :  { %2151 = vrot.lane.b32.xlu0 %v2130_v41, %s2487_s8 }
 0x4df   :  { %v1229_v37 = vpop.xlane.xlu0 %1228 }
 0x4e0   :  { %2247 = vrcp.f32 %v1229_v37 }
 0x4e7   :  { %2156 = vrot.lane.b32.xlu1 %v2135_v6, %s2487_s8 }
 0x4ed   :  { %v2248_v57 = vpop.eup %2247 }
 0x4ee   :  { %v1255_v3 = vmul.f32 %v2248_v57, %v2790_v7 }
 0x4f0   :  { %v1263_v12 = vpack.c.bf16 %v1255_v3, %v1255_v3 }
 0x514   :  { %v2137_v34 = vpop.permute.xlu1 %2136 }
 0x515   :  { %v2139_v43 = vunpack.i.h.bf16 %v2137_v34  ;;  %v2138_v58 = vunpack.i.l.bf16 %v2137_v34 }
 0x516   :  { %v2132_v59 = vpop.permute.xlu0 %2131 }
 0x517   :  { %v798_v60 = vpack.c.bf16 %v2139_v43, %v2138_v58  ;;  %v2134_v39 = vunpack.i.h.bf16 %v2132_v59  ;;  %v2133_v61 = vunpack.i.l.bf16 %v2132_v59  ;;  %v2202_v59 = vld [vmem:[#allocation16 + $0x20] sm:$0xff]  }
 0x518   :  { %v2142_v62 = vpop.permute.xlu1 %2141 }
 0x519   :  { %v797_v4 = vpack.c.bf16 %v2134_v39, %v2133_v61  ;;  %v2144_v9 = vunpack.i.h.bf16 %v2142_v62  ;;  %v2143_v10 = vunpack.i.l.bf16 %v2142_v62  ;;  %2023 = vmatpush3.bf16.msra.mxu1 %v798_v60  ;;  %v2203_v39 = vld [vmem:[#allocation16 + $0x18] sm:$0xff]  }
 0x51a   :  { %2034 = vmatprep.subr.bf16.mxu1 %v2484_v45 }
 0x51b   :  { %2017 = vmatpush3.bf16.msra.mxu0 %v797_v4  ;;  %v799_v13 = vpack.c.bf16 %v2144_v9, %v2143_v10  ;;  %v2204_v4 = vld [vmem:[#allocation16 + $0x10] sm:$0xff]  }
 0x51c   :  { %2028 = vmatprep.subr.bf16.mxu0 %v2484_v45  ;;  %v2147_v14 = vpop.permute.xlu1 %2146 }
 0x51d   :  { %v2149_v38 = vunpack.i.h.bf16 %v2147_v14  ;;  %v2148_v6 = vunpack.i.l.bf16 %v2147_v14 }
 0x51e   :  { %2019 = vmatmul.mubr.msk.bf16.vlgmr.msra.gmra.mxu0 %vm1172_vm2, %v1263_v12 }
 0x51f   :  { %2029 = vmatpush3.bf16.msra.mxu0 %v799_v13  ;;  %2030 = vmatprep.mubr.msk.bf16.mxu0 %vm2485_vm0, %v2484_v45  ;;  %v800_v63 = vpack.c.bf16 %v2149_v38, %v2148_v6  ;;  %v2205_v13 = vld [vmem:[#allocation16 + $0x8] sm:$0xff]  }
 0x520   :  { %2040 = vmatprep.subr.bf16.mxu0 %v2484_v45 }
 0x54c   :  { %v1235_v7 = vpop.xlane.xlu0 %1234 }
 0x54d   :  { %2249 = vrcp.f32 %v1235_v7 }
 0x550   :  { %v1241_v2 = vpop.xlane.xlu0 %1240 }
 0x551   :  { %2251 = vrcp.f32 %v1241_v2 }
 0x554   :  { %v2152_v8 = vpop.permute.xlu0 %2151 }
 0x555   :  { %v2154_v19 = vunpack.i.h.bf16 %v2152_v8  ;;  %v2153_v21 = vunpack.i.l.bf16 %v2152_v8 }
 0x557   :  { %v1232_v17 = vpop.xlane.xlu1 %1231  ;;  %v801_v5 = vpack.c.bf16 %v2154_v19, %v2153_v21 }
 0x558   :  { %2253 = vrcp.f32 %v1232_v17  ;;  %v2206_v17 = vld [vmem:[#allocation16] sm:$0xff]  }
 0x55a   :  { %v2250_v56 = vpop.eup %2249 }
 0x55b   :  { %v1238_v24 = vpop.xlane.xlu1 %1237  ;;  %v1257_v25 = vmul.f32 %v2250_v56, %v2238_v23 }
 0x55c   :  { %2255 = vrcp.f32 %v1238_v24 }
 0x55d   :  { %v1265_v26 = vpack.c.bf16 %v1257_v25, %v1257_v25 }
 0x55e   :  { %v2252_v27 = vpop.eup %2251 }
 0x55f   :  { %2031 = vmatmul.mubr.msk.bf16.vlgmr.msra.gmra.mxu0 %vm1172_vm2, %v1265_v26  ;;  %v1244_v33 = vpop.xlane.xlu1 %1243  ;;  %v1259_v35 = vmul.f32 %v2252_v27, %v2240_v51 }
 0x560   :  { %2041 = vmatpush3.bf16.msra.mxu0 %v801_v5  ;;  %2042 = vmatprep.mubr.msk.bf16.mxu0 %vm2485_vm0, %v2484_v45  ;;  %2257 = vrcp.f32 %v1244_v33 }
 0x561   :  { %2052 = vmatprep.subr.bf16.mxu0 %v2484_v45  ;;  %v1267_v22 = vpack.c.bf16 %v1259_v35, %v1259_v35 }
 0x563   :  { %v2157_v0 = vpop.permute.xlu1 %2156 }
 0x564   :  { %v2159_v49 = vunpack.i.h.bf16 %v2157_v0  ;;  %v2158_v23 = vunpack.i.l.bf16 %v2157_v0 }
 0x565   :  { %v2254_v36 = vpop.eup %2253  ;;  %v2843_v32 = vpop.f32.mrf.mxu1 }
 0x566   :  { %v1256_v41 = vmul.f32 %v2254_v36, %v2818_v1  ;;  %v802_v52 = vpack.c.bf16 %v2159_v49, %v2158_v23  ;;  %v1665_v49 = vrot.slane %v2794_v18, %v207_v40 }
 0x567   :  { %v2846_v42 = vpop.f32.mrf.mxu0  ;;  %v2014_v44 = vpop.f32.mrf.mxu1  ;;  %2043 = vmatmul.mubr.msk.bf16.vlgmr.msra.gmra.mxu0 %vm1172_vm2, %v1267_v22 }
 0x568   :  { %v1264_v28 = vpack.c.bf16 %v1256_v41, %v1256_v41  ;;  %2068 = vmatprep.mubr.msk.bf16.mxu0 %vm2485_vm0, %v2484_v45  ;;  %2053 = vmatpush3.bf16.msra.mxu0 %v2199_v54 }
 0x569   :  { %v2256_v46 = vpop.eup %2255  ;;  %v2008_v29 = vpop.f32.mrf.mxu0  ;;  %2054 = vmatprep.subr.bf16.mxu0 %v2484_v45 }
 0x56a   :  { %v1352_v47 = vpop.f32.mrf.mxu1  ;;  %2025 = vmatmul.mubr.msk.bf16.vlgmr.msra.gmra.mxu1 %vm1172_vm2, %v1264_v28  ;;  %v1258_v20 = vmul.f32 %v2256_v46, %v2822_v53  ;;  %v2200_v53 = vld [vmem:[#allocation16 + $0x30] sm:$0xff]  }
 0x56b   :  { %2035 = vmatpush3.bf16.msra.mxu1 %v800_v63  ;;  %v1309_v48 = vpop.f32.mrf.mxu0  ;;  %2036 = vmatprep.mubr.msk.bf16.mxu1 %vm2485_vm0, %v2484_v45 }
 0x56c   :  { %v2015_v16 = vpop.f32.mrf.mxu1  ;;  %2046 = vmatprep.subr.bf16.mxu1 %v2484_v45  ;;  %v1266_v50 = vpack.c.bf16 %v1258_v20, %v1258_v20  ;;  %2055 = vmatpush3.bf16.msra.mxu0 %v2200_v53 }
 0x56d   :  { %v2009_v11 = vpop.f32.mrf.mxu0  ;;  %v2258_v51 = vpop.eup %2257  ;;  %2056 = vmatprep.subr.bf16.mxu0 %v2484_v45 }
 0x56e   :  { %v1260_v1 = vmul.f32 %v2258_v51, %v2826_v55 }
 0x570   :  { %v1268_v30 = vpack.c.bf16 %v1260_v1, %v1260_v1  ;;  %2057 = vmatpush3.bf16.msra.mxu0 %v2201_v31 }
 0x571   :  { %2058 = vmatprep.subr.bf16.mxu0 %v2484_v45 }
 0x572   :  { %2037 = vmatmul.mubr.msk.bf16.vlgmr.msra.gmra.mxu1 %vm1172_vm2, %v1266_v50 }
 0x573   :  { %2047 = vmatpush3.bf16.msra.mxu1 %v802_v52  ;;  %2048 = vmatprep.mubr.msk.bf16.mxu1 %vm2485_vm0, %v2484_v45 }
 0x574   :  { %2059 = vmatpush3.bf16.msra.mxu0 %v2202_v59 }
 0x575   :  { %2060 = vmatprep.subr.bf16.mxu0 %v2484_v45 }
 0x578   :  { %2061 = vmatpush3.bf16.msra.mxu0 %v2203_v39 }
 0x579   :  { %2062 = vmatprep.subr.bf16.mxu0 %v2484_v45 }
 0x57a   :  { %2049 = vmatmul.mubr.msk.bf16.vlgmr.msra.gmra.mxu1 %vm1172_vm2, %v1268_v30 }
 0x57c   :  { %2063 = vmatpush3.bf16.msra.mxu0 %v2204_v4 }
 0x57d   :  { %2064 = vmatprep.subr.bf16.mxu0 %v2484_v45 }
 0x580   :  { %2065 = vmatpush3.bf16.msra.mxu0 %v2205_v13 }
 0x581   :  { %2066 = vmatprep.subr.bf16.mxu0 %v2484_v45 }
 0x584   :  { %2067 = vmatpush3.bf16.msra.mxu0 %v2206_v17 }
 0x5de   :  { %v1392_v37 = vpop.f32.mrf.mxu0 }
 0x5e0   :  { %v2020_v34 = vpop.f32.mrf.mxu0 }
 0x5e2   :  { %v1395_v57 = vpop.f32.mrf.mxu0 }
 0x5e4   :  { %v2021_v43 = vpop.f32.mrf.mxu0 }
 0x61f   :  { %v1478_v55 = vpop.f32.mrf.mxu0 }
 0x621   :  { %v2032_v58 = vpop.f32.mrf.mxu0 }
 0x623   :  { %v1481_v60 = vpop.f32.mrf.mxu0 }
 0x625   :  { %v2033_v61 = vpop.f32.mrf.mxu0 }
 0x627   :  { %v1564_v62 = vpop.f32.mrf.mxu0 }
 0x629   :  { %v2044_v3 = vpop.f32.mrf.mxu0 }
 0x62a   :  { %v1435_v9 = vpop.f32.mrf.mxu1 }
 0x62b   :  { %v2160_v10 = vpack.i.bf16 %v1435_v9, %v1392_v37  ;;  %v1567_v12 = vpop.f32.mrf.mxu0 }
 0x62c   :  { %v2026_v7 = vpop.f32.mrf.mxu1 }
 0x62d   :  { %2161 = vrot.lane.b32.xlu0 %v2160_v10, %s2487_s8  ;;  %v2045_v2 = vpop.f32.mrf.mxu0 }
 0x62e   :  { %v1438_v14 = vpop.f32.mrf.mxu1 }
 0x630   :  { %v2027_v8 = vpop.f32.mrf.mxu1 }
 0x632   :  { %v1521_v56 = vpop.f32.mrf.mxu1 }
 0x633   :  { %v2165_v19 = vpack.i.bf16 %v1521_v56, %v1478_v55 }
 0x634   :  { %v2038_v21 = vpop.f32.mrf.mxu1 }
 0x635   :  { %2166 = vrot.lane.b32.xlu1 %v2165_v19, %s2476_s1  ;;  %s2488_s1 = smov [#allocation17]  }
 0x636   :  { %v1524_v24 = vpop.f32.mrf.mxu1  ;;  %s1762_s24 = sshll.u32 %s2488_s1, 4  ;;  %s1763_s24 = int_to_ptr.vmem [resolvable:$true] %s1762_s24 }
 0x637   :  { %s2439_s11 = scalar_lea.vmem %s1763_s24, 256  ;;  %p2444_p4 = scmp.lt.s32.totalorder %s1763_s24, %s1763_s24 }
 0x638   :  { %v2039_v25 = vpop.f32.mrf.mxu1  ;;  %p2440_p3 = scmp.ne.s32.totalorder %s1763_s24, %s2439_s11  ;;  %p2445_p5 = scmp.lt.s32.totalorder %s2439_s11, %s2439_s11 }
 0x63a   :  { %v1607_v26 = vpop.f32.mrf.mxu1  ;;  %p2446_p6 = por %p2445_p5, %p2444_p4 }
 0x63b   :  { %v2170_v27 = vpack.i.bf16 %v1607_v26, %v1564_v62 }
 0x63c   :  { %v2050_v5 = vpop.f32.mrf.mxu1  ;;  %p2447_p7 = pnand %p2446_p6, %p2440_p3 }
 0x63d   :  { %2171 = vrot.lane.b32.xlu0 %v2170_v27, %s2486_s6 }
 0x63e   :  { %v1610_v33 = vpop.f32.mrf.mxu1 }
 0x640   :  { %v2051_v35 = vpop.f32.mrf.mxu1 }
 0x69f   :  { %v2162_v36 = vpop.permute.xlu0 %2161 }
 0x6a0   :  { %v2164_v6 = vunpack.i.h.bf16 %v2162_v36  ;;  %v2163_v45 = vunpack.i.l.bf16 %v2162_v36 }
 0x6a2   :  { %v1638_v28 = vsel %vm803_vm1, %v2843_v32, %v2164_v6  ;;  %v1637_v46 = vsel %vm803_vm1, %v2846_v42, %v2163_v45 }
 0x6a7   :  { %v2167_v38 = vpop.permute.xlu1 %2166 }
 0x6a8   :  { %v2169_v22 = vunpack.i.h.bf16 %v2167_v38  ;;  %v2168_v41 = vunpack.i.l.bf16 %v2167_v38 }
 0x6aa   :  { %v1641_v47 = vsel %vm1639_vm3, %v1638_v28, %v2169_v22  ;;  %v1640_v0 = vsel %vm1639_vm3, %v1637_v46, %v2168_v41 }
 0x6af   :  { %v2172_v44 = vpop.permute.xlu0 %2171 }
 0x6b0   :  { %v2174_v63 = vunpack.i.h.bf16 %v2172_v44  ;;  %v2173_v29 = vunpack.i.l.bf16 %v2172_v44 }
 0x6b2   :  { %v1644_v48 = vsel %vm1642_vm4, %v1641_v47, %v2174_v63  ;;  %v1643_v16 = vsel %vm1642_vm4, %v1640_v0, %v2173_v29 }
 0x6b3   :  { %v1645_v20 = vpack.c.bf16 %v1644_v48, %v1643_v16 }
 0x6b5   :  { %2069 = vmatmul.mubr.bf16.vlgmr.msra.gmra.mxu0 %v1645_v20 }
 0x775   :  { %v1748_v23 = vpop.f32.mrf.mxu0 }
 0x776   :  { %v1749_v11 = vadd.f32 %v1748_v23, %v1665_v49 }
 0x777   :  { %v2070_v50 = vpop.f32.mrf.mxu0 }
 0x778   :  { %1755 = vst [vmem:[#allocation17] sm:$0xff] %v1749_v11 }
 0x779   :  { %v1751_v32 = vpop.f32.mrf.mxu0 }
 0x77a   :  { %v1752_v42 = vadd.f32 %v1751_v32, %v1665_v49 }
 0x77b   :  { %v2071_v51 = vpop.f32.mrf.mxu0 }
 0x77c   :  { %1756 = vst [vmem:[#allocation17 + $0x8] sm:$0xff] %v1752_v42 }
 0x77d   :  { %2450 = shalt.err (!%p2447_p7)
}
 0x77e   :  { %1768 = dma.vmem_to_hbm [thread:$0]  %s1763_s24, 256, %s2893_s9, [#allocation4], %s2473_s14, %s2473_s14, %s2474_s15  }
 0x77f   :  { %2469 = dma.done.wait [#allocation4], 256  }
 0x780   :  { %2470 = vsyncadd [#allocation4], 4294967040 }
 0x781   :  { %1772 = vsyncpa [#allocation3], 1 }
 0x782   :  { %1773 = vsyncpa [#allocation6], 1 }
 0x783   :  { %1774 = vsyncpa [#allocation9], 1 }
 0x784   :  { %1775 = vsyncpa [#allocation12], 1 }
 0x785   :  { %1776 = vsyncpa [#allocation15], 1 }
 0x786   :  { %1777 = vsyncpa [#allocation4], 1 }

</bundles_post_ra>
